<compile_context>
chip_gen: v5e
topology: v5e:2x2
jax: 0.10.0
libtpu: 0.0.40
codegen_flags: <defaults>
</compile_context>

<pallas_src>
import functools

import numpy as np
import jax
import jax.numpy as jnp
from jax.experimental import pallas as pl
from jax.experimental.pallas import tpu as pltpu

_HIGHEST = jax.lax.Precision.HIGHEST


def _hosvd_fused_kernel(x_ref, u_ref, c_ref, s_ref, t_ref, uo_ref, bo_ref, o_ref,
                        *, n_ch, precision):
    """One (aggregator-group, batch-tile) block per grid step.

    x_ref : (n_ch, bt, in_size)     channel-major batch tile
    u_ref : (1, n_ch, in_size, GR)  GR = ga*rank  (aggregators folded into lanes)
    c_ref : (1, n_ch, 1, GP)        GP = ga*P     (input bias + "+1" augmentation)
    s_ref : (n_ch, GR, GP)          block-diagonal 0/1 Khatri-Rao selectors
    t_ref : (1, GP, GR)             block-diagonal flattened AugmentedTensor cores
    uo_ref: (1, GR, GO)             GO = ga*out   block-diagonal output projection
    bo_ref: (1, 1, GO)
    o_ref : (bt, GO)
    """
    kr = None
    for i in range(n_ch):
        # Per-child projection, all aggregators of the group at once (wide N = GR).
        g_i = jnp.dot(x_ref[i], u_ref[0, i],
                      preferred_element_type=jnp.float32, precision=precision)
        # Khatri-Rao factor of the augmented input for every aggregator at once;
        # the input bias and the augmentation "1" row are pre-folded into c.
        f_i = jnp.dot(g_i, s_ref[i],
                      preferred_element_type=jnp.float32, precision=precision) + c_ref[0, i]
        kr = f_i if kr is None else kr * f_i                               # (bt, GP)
    # All remaining tensor modes in one wide MXU matmul (block-diagonal core).
    r = jnp.dot(kr, t_ref[0], preferred_element_type=jnp.float32, precision=precision)
    # Block-diagonal output projection -> whole (bt, GO) block, one lane-dense store.
    out = jnp.dot(r, uo_ref[0],
                  preferred_element_type=jnp.float32, precision=precision) + bo_ref[0]
    o_ref[...] = out.astype(o_ref.dtype)


def _round_up(x, m):
    return ((x + m - 1) // m) * m


def _padded_bytes(shape, dtype_bytes=4):
    """f32 VMEM footprint with (8,128) sublane/lane padding on the last two dims."""
    s = list(shape)
    s[-1] = _round_up(s[-1], 128)
    if len(s) >= 2:
        s[-2] = _round_up(s[-2], 8)
    n = 1
    for v in s:
        n *= v
    return n * dtype_bytes


def _step_vmem_bytes(bt, ga, n_ch, in_size, rank, out_size, P):
    """Padded per-step working set: all blocks (x2 double-buffered) + live values."""
    GR, GP, GO = ga * rank, ga * P, ga * out_size
    db = 2                                             # Pallas double-buffers blocks
    total = 0
    total += db * _padded_bytes((n_ch, bt, in_size))   # x tile
    total += db * _padded_bytes((n_ch, in_size, GR))   # U block
    total += db * _padded_bytes((n_ch, 1, GP))         # folded bias block
    total += db * _padded_bytes((n_ch, GR, GP))        # selectors
    total += db * _padded_bytes((GP, GR))              # T block
    total += db * _padded_bytes((GR, GO))              # U_output block
    total += db * _padded_bytes((1, GO))               # b_output block
    total += db * _padded_bytes((bt, GO))              # output tile
    total += 2 * _padded_bytes((bt, GP))               # kr + current factor
    total += 2 * _padded_bytes((bt, GR))               # projection + core result
    total += _padded_bytes((bt, GO))                   # out value
    return total


def _pick_blocks(bs, n_aggr, n_ch, in_size, rank, out_size, P, budget_bytes, sublane):
    """Pick (aggregators per step, batch rows per step)."""
    divisors = [g for g in range(1, n_aggr + 1) if n_aggr % g == 0]
    # Output block's lane dim must be a multiple of 128 or cover the full array.
    valid_ga = [g for g in divisors if g == n_aggr or (g * out_size) % 128 == 0]
    # Lane density: smallest ga reaching 128-wide N on both projections if possible.
    both = [g for g in valid_ga if g * out_size >= 128 and g * rank >= 128]
    outw = [g for g in valid_ga if g * out_size >= 128]
    ga = min(both) if both else (min(outw) if outw else n_aggr)

    # Batch tile: sublane-aligned divisor of bs, target <= 512 rows per step.
    bt_cands = [t for t in range(sublane, min(bs, 512) + 1, sublane) if bs % t == 0]
    if not bt_cands:
        bt_cands = [bs]
    bt = max(bt_cands)
    # Prefer >=2 grid steps when possible (v7x has 2 TensorCores to feed).
    if (n_aggr // ga) * (bs // bt) < 2:
        smaller = [t for t in bt_cands if t < bt]
        if smaller:
            bt = max(smaller)

    # Shrink until the padded per-step working set fits the budget.
    while _step_vmem_bytes(bt, ga, n_ch, in_size, rank, out_size, P) > budget_bytes:
        smaller_ga = [g for g in valid_ga if g < ga]
        if smaller_ga:
            ga = max(smaller_ga)
            continue
        smaller_bt = [t for t in bt_cands if t < bt]
        if smaller_bt:
            bt = max(smaller_bt)
            continue
        break  # nothing left to shrink; let the compiler decide
    return ga, bt


def hosvd_forward(batched_in_el, U, b, T, U_output, b_output, *, precision=_HIGHEST):
    """Fused Hosvd.forward.

    batched_in_el: (bs, n_ch, in_size)
    U            : (max_output_degree, n_aggr, in_size, rank)
    b            : (max_output_degree, n_aggr, 1, rank)
    T            : (n_aggr, rank+1, ..., rank+1, rank)   stacked AugmentedTensor cores
    U_output     : (n_aggr, rank, out_size)
    b_output     : (n_aggr, 1, out_size)
    returns      : (bs, n_aggr * out_size)   == PyTorch ris.view(bs, -1)
    """
    bs, n_ch, in_size = batched_in_el.shape
    max_deg, n_aggr, _, rank = U.shape
    out_size = U_output.shape[-1]
    if n_ch != max_deg:
        # TODO(synk): PyTorch's missing-input branch (stale-h reuse) not reproduced.
        raise NotImplementedError("n_ch must equal max_output_degree")
    d = rank + 1
    P = d ** n_ch

    # --- per-generation VMEM budget / limit ---
    try:
        vmem_cap = int(pltpu.get_tpu_info().vmem_capacity_bytes)
    except Exception:
        vmem_cap = 64 * 1024 * 1024                       # conservative (v7x)
    vmem_limit = min(vmem_cap * 3 // 4, 100 * 1024 * 1024)  # ~48MiB v7x, ~96MiB v5e/v6e
    budget = int(vmem_limit * 0.85)                          # headroom for Mosaic scratch

    itemsize = jnp.dtype(batched_in_el.dtype).itemsize
    sublane = max(8, 32 // max(itemsize, 1))              # 8 for f32, 16 for bf16
    ga, bt = _pick_blocks(bs, n_aggr, n_ch, in_size, rank, out_size, P, budget, sublane)
    n_groups = n_aggr // ga
    GR, GP, GO = ga * rank, ga * P, ga * out_size

    # --- activations: single channel-major transpose of x (tile-aligned slabs) ---
    x_cm = jnp.transpose(batched_in_el, (1, 0, 2))        # (n_ch, bs, in_size)

    # --- parameter-only re-layouts (fold aggregators into the lane dim) ---
    f32 = jnp.float32
    u_fold = jnp.transpose(U, (1, 0, 2, 3)).astype(f32)   # (n_aggr, n_ch, in, rank)
    u_fold = u_fold.reshape(n_groups, ga, n_ch, in_size, rank)
    u_fold = jnp.transpose(u_fold, (0, 2, 3, 1, 4)).reshape(n_groups, n_ch, in_size, GR)

    b_fold = jnp.transpose(b[:, :, 0, :], (1, 0, 2)).astype(f32)      # (n_aggr, n_ch, rank)
    b_fold = b_fold.reshape(n_groups, ga, n_ch, rank)
    b_fold = jnp.transpose(b_fold, (0, 2, 1, 3)).reshape(n_groups, n_ch, 1, GR)

    # Constant 0/1 Khatri-Rao selectors (block-diagonal over aggregators) and the
    # augmentation "1" indicator; both also absorb the input bias b below.
    col = np.arange(P)
    s_top = np.zeros((n_ch, rank, P), np.float32)
    s_aug = np.zeros((n_ch, P), np.float32)
    stride = P
    for i in range(n_ch):
        stride //= d
        idx = (col // stride) % d
        s_top[i] = (idx[None, :] == np.arange(rank)[:, None]).astype(np.float32)
        s_aug[i] = (idx == rank).astype(np.float32)
    eye = np.eye(ga, dtype=np.float32)
    s_bd = jnp.asarray(np.stack([np.kron(eye, s_top[i]) for i in range(n_ch)], axis=0))
    s_aug_t = jnp.asarray(np.tile(s_aug, (1, ga)))        # (n_ch, GP)

    # Per-channel bias c = b @ S + aug  (hoists every broadcast out of the kernel).
    c = jnp.einsum('gciR,cRp->gcip', b_fold, s_bd,
                   precision=_HIGHEST) + s_aug_t[None, :, None, :]      # (n_groups,n_ch,1,GP)

    eye_j = jnp.asarray(eye)
    t_flat = T.astype(f32).reshape(n_groups, ga, P, rank)
    t_bd = jnp.einsum('gapr,ab->gapbr', t_flat, eye_j).reshape(n_groups, GP, GR)

    uo = U_output.astype(f32).reshape(n_groups, ga, rank, out_size)
    uo_bd = jnp.einsum('garo,ab->garbo', uo, eye_j).reshape(n_groups, GR, GO)
    bo = b_output.astype(f32).reshape(n_groups, ga * out_size).reshape(n_groups, 1, GO)

    grid = (n_groups, bs // bt)   # batch innermost: params stay resident, x/out stream
    kernel = functools.partial(_hosvd_fused_kernel, n_ch=n_ch, precision=precision)

    out = pl.pallas_call(
        kernel,
        out_shape=jax.ShapeDtypeStruct((bs, n_aggr * out_size), batched_in_el.dtype),
        grid=grid,
        in_specs=[
            pl.BlockSpec((n_ch, bt, in_size), lambda g, t: (0, t, 0)),        # x (channel-major)
            pl.BlockSpec((1, n_ch, in_size, GR), lambda g, t: (g, 0, 0, 0)),  # U (folded)
            pl.BlockSpec((1, n_ch, 1, GP), lambda g, t: (g, 0, 0, 0)),        # c (bias+aug)
            pl.BlockSpec((n_ch, GR, GP), lambda g, t: (0, 0, 0)),             # selectors
            pl.BlockSpec((1, GP, GR), lambda g, t: (g, 0, 0)),                # T (block-diag)
            pl.BlockSpec((1, GR, GO), lambda g, t: (g, 0, 0)),                # U_output (block-diag)
            pl.BlockSpec((1, 1, GO), lambda g, t: (g, 0, 0)),                 # b_output
        ],
        out_specs=pl.BlockSpec((bt, GO), lambda g, t: (t, g)),
        compiler_params=pltpu.CompilerParams(
            dimension_semantics=("parallel", "parallel"),
            vmem_limit_bytes=int(vmem_limit)),
    )(x_cm, u_fold, c, s_bd, t_bd, uo_bd, bo)
    return out


def hosvd_reference(x, U, b, T, U_output, b_output):
    """Pure-JAX reference mirroring the PyTorch forward exactly."""
    bs, n_ch, _ = x.shape
    n_aggr, rank, out_size = U_output.shape
    d = rank + 1
    g = jnp.einsum('bik,ijkr->bijr', x, U[:n_ch], precision=_HIGHEST) \
        + b[:n_ch, :, 0, :][None]                                   # (bs, n_ch, n_aggr, rank)
    h = jnp.concatenate([g, jnp.ones(g.shape[:-1] + (1,), g.dtype)], axis=-1)
    outs = []
    for j in range(n_aggr):
        Tj = T[j]
        rest = int(np.prod(Tj.shape[1:]))
        R = jnp.matmul(h[:, 0, j, :], Tj.reshape(d, -1), precision=_HIGHEST)
        for i in range(1, n_ch):
            rest //= d
            R = jnp.einsum('bk,bkr->br', h[:, i, j, :], R.reshape(bs, d, rest),
                           precision=_HIGHEST)
        out_j = jnp.matmul(R, U_output[j], precision=_HIGHEST) + b_output[j]
        outs.append(out_j)
    return jnp.concatenate(outs, axis=-1)                            # (bs, n_aggr*out)


if __name__ == "__main__":
    key = jax.random.PRNGKey(0)

    # Small shapes consistent with Hosvd: t_size=None, n_ch == max_output_degree.
    # bs=64 exercises the batch grid axis (two batch tiles of 32 rows).
    bs = 64
    in_size = 16
    out_size = 32
    rank = 8
    max_output_degree = 2
    n_ch = max_output_degree
    n_aggr = 2
    d = rank + 1

    keys = jax.random.split(key, 6)

    def xavier(k, shape, fan_in, fan_out):
        bound = float(np.sqrt(6.0 / (fan_in + fan_out)))
        return jax.random.uniform(k, shape, minval=-bound, maxval=bound, dtype=jnp.float32)

    x = jax.random.normal(keys[0], (bs, n_ch, in_size), dtype=jnp.float32)
    U = xavier(keys[1], (max_output_degree, n_aggr, in_size, rank), in_size, rank)
    b = xavier(keys[2], (max_output_degree, n_aggr, 1, rank), 1, rank)
    T = xavier(keys[3], (n_aggr,) + (d,) * n_ch + (rank,), d * rank, d * rank)
    U_output = xavier(keys[4], (n_aggr, rank, out_size), rank, out_size)
    b_output = xavier(keys[5], (n_aggr, 1, out_size), 1, out_size)

    out = hosvd_forward(x, U, b, T, U_output, b_output)
    out = jax.block_until_ready(out)

    ref = hosvd_reference(x, U, b, T, U_output, b_output)
    assert out.shape == (bs, n_aggr * out_size)
    np.testing.assert_allclose(np.asarray(out), np.asarray(ref), rtol=1e-4, atol=1e-4)
    print("KERNEL_OK")
</pallas_src>

<mosaic_0001>
module attributes {stable_mosaic.version = 11 : i64} {
  func.func @_hosvd_fused_kernel(%arg0: i32, %arg1: i32, %arg2: memref<2x32x16xf32, #tpu.memory_space<vmem>>, %arg3: memref<1x2x16x16xf32, #tpu.memory_space<vmem>>, %arg4: memref<1x2x1x162xf32, #tpu.memory_space<vmem>>, %arg5: memref<2x16x162xf32, #tpu.memory_space<vmem>>, %arg6: memref<1x162x16xf32, #tpu.memory_space<vmem>>, %arg7: memref<1x16x64xf32, #tpu.memory_space<vmem>>, %arg8: memref<1x1x64xf32, #tpu.memory_space<vmem>>, %arg9: memref<32x64xf32, #tpu.memory_space<vmem>>) attributes {dimension_semantics = [#tpu.dimension_semantics<parallel>, #tpu.dimension_semantics<parallel>], iteration_bounds = array<i64: 1, 2>, scalar_prefetch = 0 : i64, scratch_operands = 0 : i64, tpu.core_type = #tpu.core_type<tc>, window_params = [{transform_indices = @transform_0, window_bounds = array<i64: 2, 32, 16>}, {transform_indices = @transform_1, window_bounds = array<i64: 1, 2, 16, 16>}, {transform_indices = @transform_2, window_bounds = array<i64: 1, 2, 1, 162>}, {pipeline_mode = #tpu.pipeline_mode<synchronous>, transform_indices = @transform_3, window_bounds = array<i64: 2, 16, 162>}, {transform_indices = @transform_4, window_bounds = array<i64: 1, 162, 16>}, {transform_indices = @transform_5, window_bounds = array<i64: 1, 16, 64>}, {transform_indices = @transform_6, window_bounds = array<i64: 1, 1, 64>}, {transform_indices = @transform_7, window_bounds = array<i64: 32, 64>}]} {
    %c0 = arith.constant 0 : index
    %c0_0 = arith.constant 0 : index
    %c0_1 = arith.constant 0 : index
    %0 = vector.load %arg2[%c0, %c0_0, %c0_1] : memref<2x32x16xf32, #tpu.memory_space<vmem>>, vector<1x32x16xf32>
    %1 = vector.shape_cast %0 : vector<1x32x16xf32> to vector<32x16xf32>
    %c0_2 = arith.constant 0 : index
    %c0_3 = arith.constant 0 : index
    %c0_4 = arith.constant 0 : index
    %c0_5 = arith.constant 0 : index
    %2 = vector.load %arg3[%c0_2, %c0_3, %c0_4, %c0_5] : memref<1x2x16x16xf32, #tpu.memory_space<vmem>>, vector<1x1x16x16xf32>
    %3 = vector.shape_cast %2 : vector<1x1x16x16xf32> to vector<16x16xf32>
    %cst = arith.constant dense<0.000000e+00> : vector<32x16xf32>
    %4 = tpu.matmul %1, %3, %cst {dimension_numbers = #tpu.dot_dimension_numbers<[1], [0], [0], [1], [0, 0, 1, 1], [], []>, precision = #tpu.contract_precision<fp32>} : vector<32x16xf32>, vector<16x16xf32>, vector<32x16xf32> -> vector<32x16xf32>
    %c0_6 = arith.constant 0 : index
    %c0_7 = arith.constant 0 : index
    %c0_8 = arith.constant 0 : index
    %5 = vector.load %arg5[%c0_6, %c0_7, %c0_8] : memref<2x16x162xf32, #tpu.memory_space<vmem>>, vector<1x16x162xf32>
    %6 = vector.shape_cast %5 : vector<1x16x162xf32> to vector<16x162xf32>
    %cst_9 = arith.constant dense<0.000000e+00> : vector<32x162xf32>
    %7 = tpu.matmul %4, %6, %cst_9 {dimension_numbers = #tpu.dot_dimension_numbers<[1], [0], [0], [1], [0, 0, 1, 1], [], []>, precision = #tpu.contract_precision<fp32>} : vector<32x16xf32>, vector<16x162xf32>, vector<32x162xf32> -> vector<32x162xf32>
    %c0_10 = arith.constant 0 : index
    %c0_11 = arith.constant 0 : index
    %c0_12 = arith.constant 0 : index
    %c0_13 = arith.constant 0 : index
    %8 = vector.load %arg4[%c0_10, %c0_11, %c0_12, %c0_13] : memref<1x2x1x162xf32, #tpu.memory_space<vmem>>, vector<1x1x1x162xf32>
    %9 = vector.shape_cast %8 : vector<1x1x1x162xf32> to vector<1x162xf32>
    %10 = vector.broadcast %9 : vector<1x162xf32> to vector<32x162xf32>
    %11 = arith.addf %7, %10 : vector<32x162xf32>
    %c1 = arith.constant 1 : index
    %c0_14 = arith.constant 0 : index
    %c0_15 = arith.constant 0 : index
    %12 = vector.load %arg2[%c1, %c0_14, %c0_15] : memref<2x32x16xf32, #tpu.memory_space<vmem>>, vector<1x32x16xf32>
    %13 = vector.shape_cast %12 : vector<1x32x16xf32> to vector<32x16xf32>
    %c0_16 = arith.constant 0 : index
    %c1_17 = arith.constant 1 : index
    %c0_18 = arith.constant 0 : index
    %c0_19 = arith.constant 0 : index
    %14 = vector.load %arg3[%c0_16, %c1_17, %c0_18, %c0_19] : memref<1x2x16x16xf32, #tpu.memory_space<vmem>>, vector<1x1x16x16xf32>
    %15 = vector.shape_cast %14 : vector<1x1x16x16xf32> to vector<16x16xf32>
    %cst_20 = arith.constant dense<0.000000e+00> : vector<32x16xf32>
    %16 = tpu.matmul %13, %15, %cst_20 {dimension_numbers = #tpu.dot_dimension_numbers<[1], [0], [0], [1], [0, 0, 1, 1], [], []>, precision = #tpu.contract_precision<fp32>} : vector<32x16xf32>, vector<16x16xf32>, vector<32x16xf32> -> vector<32x16xf32>
    %c1_21 = arith.constant 1 : index
    %c0_22 = arith.constant 0 : index
    %c0_23 = arith.constant 0 : index
    %17 = vector.load %arg5[%c1_21, %c0_22, %c0_23] : memref<2x16x162xf32, #tpu.memory_space<vmem>>, vector<1x16x162xf32>
    %18 = vector.shape_cast %17 : vector<1x16x162xf32> to vector<16x162xf32>
    %cst_24 = arith.constant dense<0.000000e+00> : vector<32x162xf32>
    %19 = tpu.matmul %16, %18, %cst_24 {dimension_numbers = #tpu.dot_dimension_numbers<[1], [0], [0], [1], [0, 0, 1, 1], [], []>, precision = #tpu.contract_precision<fp32>} : vector<32x16xf32>, vector<16x162xf32>, vector<32x162xf32> -> vector<32x162xf32>
    %c0_25 = arith.constant 0 : index
    %c1_26 = arith.constant 1 : index
    %c0_27 = arith.constant 0 : index
    %c0_28 = arith.constant 0 : index
    %20 = vector.load %arg4[%c0_25, %c1_26, %c0_27, %c0_28] : memref<1x2x1x162xf32, #tpu.memory_space<vmem>>, vector<1x1x1x162xf32>
    %21 = vector.shape_cast %20 : vector<1x1x1x162xf32> to vector<1x162xf32>
    %22 = vector.broadcast %21 : vector<1x162xf32> to vector<32x162xf32>
    %23 = arith.addf %19, %22 : vector<32x162xf32>
    %24 = arith.mulf %11, %23 : vector<32x162xf32>
    %c0_29 = arith.constant 0 : index
    %c0_30 = arith.constant 0 : index
    %c0_31 = arith.constant 0 : index
    %25 = vector.load %arg6[%c0_29, %c0_30, %c0_31] : memref<1x162x16xf32, #tpu.memory_space<vmem>>, vector<1x162x16xf32>
    %26 = vector.shape_cast %25 : vector<1x162x16xf32> to vector<162x16xf32>
    %cst_32 = arith.constant dense<0.000000e+00> : vector<32x16xf32>
    %27 = tpu.matmul %24, %26, %cst_32 {dimension_numbers = #tpu.dot_dimension_numbers<[1], [0], [0], [1], [0, 0, 1, 1], [], []>, precision = #tpu.contract_precision<fp32>} : vector<32x162xf32>, vector<162x16xf32>, vector<32x16xf32> -> vector<32x16xf32>
    %c0_33 = arith.constant 0 : index
    %c0_34 = arith.constant 0 : index
    %c0_35 = arith.constant 0 : index
    %28 = vector.load %arg7[%c0_33, %c0_34, %c0_35] : memref<1x16x64xf32, #tpu.memory_space<vmem>>, vector<1x16x64xf32>
    %29 = vector.shape_cast %28 : vector<1x16x64xf32> to vector<16x64xf32>
    %cst_36 = arith.constant dense<0.000000e+00> : vector<32x64xf32>
    %30 = tpu.matmul %27, %29, %cst_36 {dimension_numbers = #tpu.dot_dimension_numbers<[1], [0], [0], [1], [0, 0, 1, 1], [], []>, precision = #tpu.contract_precision<fp32>} : vector<32x16xf32>, vector<16x64xf32>, vector<32x64xf32> -> vector<32x64xf32>
    %c0_37 = arith.constant 0 : index
    %c0_38 = arith.constant 0 : index
    %c0_39 = arith.constant 0 : index
    %31 = vector.load %arg8[%c0_37, %c0_38, %c0_39] : memref<1x1x64xf32, #tpu.memory_space<vmem>>, vector<1x1x64xf32>
    %32 = vector.shape_cast %31 : vector<1x1x64xf32> to vector<1x64xf32>
    %33 = vector.broadcast %32 : vector<1x64xf32> to vector<32x64xf32>
    %34 = arith.addf %30, %33 : vector<32x64xf32>
    %c0_40 = arith.constant 0 : index
    %c0_41 = arith.constant 0 : index
    %35 = vector.load %arg9[%c0_40, %c0_41] : memref<32x64xf32, #tpu.memory_space<vmem>>, vector<32x64xf32>
    tpu.vector_store %arg9[%c0_40, %c0_41], %34 {strides = array<i32>} : memref<32x64xf32, #tpu.memory_space<vmem>>, vector<32x64xf32>,
    return
  }
  func.func @transform_0(%arg0: i32, %arg1: i32) -> (i32, i32, i32) {
    %c0_i32 = arith.constant 0 : i32
    %c0_i32_0 = arith.constant 0 : i32
    %c0_i32_1 = arith.constant 0 : i32
    return %c0_i32, %arg1, %c0_i32_0 : i32, i32, i32
  }
  func.func @transform_1(%arg0: i32, %arg1: i32) -> (i32, i32, i32, i32) {
    %c0_i32 = arith.constant 0 : i32
    %c0_i32_0 = arith.constant 0 : i32
    %c0_i32_1 = arith.constant 0 : i32
    %c0_i32_2 = arith.constant 0 : i32
    return %arg0, %c0_i32, %c0_i32_0, %c0_i32_1 : i32, i32, i32, i32
  }
  func.func @transform_2(%arg0: i32, %arg1: i32) -> (i32, i32, i32, i32) {
    %c0_i32 = arith.constant 0 : i32
    %c0_i32_0 = arith.constant 0 : i32
    %c0_i32_1 = arith.constant 0 : i32
    %c0_i32_2 = arith.constant 0 : i32
    return %arg0, %c0_i32, %c0_i32_0, %c0_i32_1 : i32, i32, i32, i32
  }
  func.func @transform_3(%arg0: i32, %arg1: i32) -> (i32, i32, i32) {
    %c0_i32 = arith.constant 0 : i32
    %c0_i32_0 = arith.constant 0 : i32
    %c0_i32_1 = arith.constant 0 : i32
    %c0_i32_2 = arith.constant 0 : i32
    return %c0_i32, %c0_i32_0, %c0_i32_1 : i32, i32, i32
  }
  func.func @transform_4(%arg0: i32, %arg1: i32) -> (i32, i32, i32) {
    %c0_i32 = arith.constant 0 : i32
    %c0_i32_0 = arith.constant 0 : i32
    %c0_i32_1 = arith.constant 0 : i32
    return %arg0, %c0_i32, %c0_i32_0 : i32, i32, i32
  }
  func.func @transform_5(%arg0: i32, %arg1: i32) -> (i32, i32, i32) {
    %c0_i32 = arith.constant 0 : i32
    %c0_i32_0 = arith.constant 0 : i32
    %c0_i32_1 = arith.constant 0 : i32
    return %arg0, %c0_i32, %c0_i32_0 : i32, i32, i32
  }
  func.func @transform_6(%arg0: i32, %arg1: i32) -> (i32, i32, i32) {
    %c0_i32 = arith.constant 0 : i32
    %c0_i32_0 = arith.constant 0 : i32
    %c0_i32_1 = arith.constant 0 : i32
    return %arg0, %c0_i32, %c0_i32_0 : i32, i32, i32
  }
  func.func @transform_7(%arg0: i32, %arg1: i32) -> (i32, i32) {
    %c0_i32 = arith.constant 0 : i32
    return %arg1, %arg0 : i32, i32
  }
}

</mosaic_0001>

<bundles_post_ra>
// kernel: tpu_custom_call.1
= control target key start
LH: loop header
LB: loop body
LE: loop exit
PB: predicated region body
PF: predicated region fallthrough
CT: control target
= control target key end

     0   :  { %12 = vsyncpa [#allocation4], 0  ;;  %s4460_s0 = inlined_call_operand.vmem [shape: f32[2,64,16], index: 0, kind: input, shape index: {}]   ;;  %s4461_s1 = inlined_call_operand.vmem [shape: f32[1,2,16,16], index: 1, kind: input, shape index: {}]   ;;  %s4462_s2 = inlined_call_operand.vmem [shape: f32[1,2,1,162], index: 2, kind: input, shape index: {}]   ;;  %s4463_s3 = inlined_call_operand.vmem [shape: f32[2,16,162], index: 3, kind: input, shape index: {}]   ;;  %s4464_s4 = inlined_call_operand.vmem [shape: f32[1,162,16], index: 4, kind: input, shape index: {}]   ;;  %s4465_s5 = inlined_call_operand.vmem [shape: f32[1,16,64], index: 5, kind: input, shape index: {}]   ;;  %s4466_s6 = inlined_call_operand.vmem [shape: f32[1,1,64], index: 6, kind: input, shape index: {}]   ;;  %s4467_s7 = inlined_call_operand.hbm [shape: f32[64,64], index: 7, kind: output, shape index: {}]  }
   0x1   :  { %14 = vsyncpa [#allocation4 + $0x1], 0  ;;  %s3475_s24 = smov 0   ;;  %s3477_s25 = smov 0  }
   0x2   :  { %s3479_s26 = smov 0   ;;  %s3481_s27 = smov 0  }
   0x3   :  { %s3483_s28 = smov 0   ;;  %s3485_s29 = smov 0  }
   0x4 LB: > { %s3258_s30 = sadd.s32 4294967295, %s3431_s29   ;;  %s3259_s8 = sadd.s32 4294967294, %s3431_s29   ;;  %s3431_s29 = sphi %s3485_s29, %s20_s29   ;;  %s3427_s28 = sphi %s3483_s28, %s4571_s28   ;;  %s3423_s27 = sphi %s3481_s27, %s4570_s27   ;;  %s3419_s26 = sphi %s3479_s26, %s4569_s26   ;;  %s3415_s25 = sphi %s3477_s25, %s4568_s25   ;;  %s3411_s24 = sphi %s3475_s24, %s4567_s24  }
   0x5   : > { %s29_s9 = sadd.s32 1, %s3427_s28  ;;  %s39_s10 = sadd.s32 1, %s3419_s26 }
   0x6   : > { %p30_p0 = scmp.ge.s32.totalorder %s29_s9, 2  ;;  %p46_p1 = scmp.ne.s32.totalorder %s3419_s26, %s3415_s25 }
   0x7   : > { %p47_p2 = scmp.eq.s32.totalorder %s3431_s29, 0  ;;  %p229_p3 = scmp.eq.s32.totalorder %s3258_s30, 1 }
   0x8   : > { %s4573_s9 = smov (%p30_p0, %s29_s9), 0  ;;  %p234_p6 = scmp.ne.s32.totalorder %s3415_s25, %s3411_s24 }
   0x9   : > { %p48_p4 = por %p47_p2, %p46_p1  ;;  %p3514_p5 = por %p229_p3, %p46_p1 }
   0xa   : > { %s36_s12 = ssub.s32 %s3427_s28, %s4573_s9  ;;  %p235_p8 = scmp.eq.s32.totalorder %s3259_s8, 1 }
   0xb   : > { %p37_p7 = scmp.eq.s32.totalorder %s36_s12, 0  ;;  %p3266_p10 = scmp.ge.s32.totalorder %s3431_s29, 2 }
   0xc   : > { %p3525_p9 = por %p235_p8, %p234_p6 }
   0xd   : > { %s3523_s13 = scalar_select %p37_p7, %s3419_s26, %s39_s10  }
   0xe   : > { %291 = sbr.rel (%p3266_p10) target bundleno = 31 (0x1f), region = 40 }
  0x13   : > { %294 = sbr.rel (!%p48_p4) target bundleno = 31 (0x1f), region = 44  ;;  %s296_s15 = sand.u32 (%p48_p4), 1, %s3419_s26  }
  0x14   : > { %s3289_s16 = sshll.u32 (%p48_p4), %s3427_s28, 5  ;;  %s3267_s17 = sshll.u32 (%p48_p4), %s296_s15, 6 }
  0x15   : > { %s301_s20 = scalar_lea.vmem (%p48_p4), %s4460_s0, %s3289_s16  ;;  %s298_s21 = scalar_lea.vmem (%p48_p4), [#allocation2], %s3267_s17 }
  0x16   : > { %v344_v0 = vld [vmem:[%s301_s20] sm:$0xff] (%p48_p4)  ;;  %v346_v1 = vld [vmem:[%s301_s20 + $0x8] sm:$0xff] (%p48_p4)  ;;  %v348_v2 = vld [vmem:[%s301_s20 + $0x10] sm:$0xff] (%p48_p4) }
  0x17   : > { %345 = vst [vmem:[%s298_s21] sm:$0xff] (%p48_p4), %v344_v0  ;;  %v350_v3 = vld [vmem:[%s301_s20 + $0x18] sm:$0xff] (%p48_p4)  ;;  %v352_v4 = vld [vmem:[%s301_s20 + $0x40] sm:$0xff] (%p48_p4)  ;;  %v354_v5 = vld [vmem:[%s301_s20 + $0x48] sm:$0xff] (%p48_p4) }
  0x18   : > { %347 = vst [vmem:[%s298_s21 + $0x8] sm:$0xff] %v346_v1  ;;  %v356_v6 = vld [vmem:[%s301_s20 + $0x50] sm:$0xff]  ;;  %v358_v7 = vld [vmem:[%s301_s20 + $0x58] sm:$0xff] }
  0x19   : > { %349 = vst [vmem:[%s298_s21 + $0x10] sm:$0xff] %v348_v2 }
  0x1a   : > { %351 = vst [vmem:[%s298_s21 + $0x18] sm:$0xff] %v350_v3 }
  0x1b   : > { %353 = vst [vmem:[%s298_s21 + $0x20] sm:$0xff] %v352_v4 }
  0x1c   : > { %355 = vst [vmem:[%s298_s21 + $0x28] sm:$0xff] %v354_v5 }
  0x1d   : > { %357 = vst [vmem:[%s298_s21 + $0x30] sm:$0xff] %v356_v6 }
  0x1e   : > { %359 = vst [vmem:[%s298_s21 + $0x38] sm:$0xff] %v358_v7 }
  0x1f PF: > { %p3270_p11 = scmp.ge.s32.totalorder %s3431_s29, 1  ;;  %p364_p12 = scmp.lt.s32.totalorder %s3431_s29, 3 }
  0x21   : > { %p365_p13 = pnand %p3270_p11, %p364_p12 }
  0x23   : > { %368 = sbr.rel (%p365_p13) target bundleno = 1077 (0x435), region = 82 }
  0x28   : > { %v453_v8 = vld [vmem:[%s4461_s1 + $0x8] sm:$0xff]  ;;  %v452_v9 = vld [vmem:[%s4461_s1] sm:$0xff]  ;;  %s3546_s10 = sand.u32 1, %s3415_s25   ;;  %vm454_vm0 = vcmask 130048   ;;  %v721_v48 = vld [vmem:[%s4463_s3 + $0x10] sm:$0xff]  ;;  %vm2087_vm1 = vcmask 1041408  }
  0x29   : > { %v481_v10 = vand.u32 4294901760, %v453_v8  ;;  %v483_v11 = vand.u32 4294901760, %v452_v9  ;;  %s3271_s12 = sshll.u32 %s3546_s10, 6  ;;  %v755_v49 = vand.u32 4294901760, %v721_v48  ;;  %v719_v54 = vld [vmem:[%s4463_s3] sm:$0xff]  ;;  %vm2074_vm2 = vcmask 277504  }
  0x2a   : > { %s3549_s15 = scalar_lea.vmem [#allocation2], %s3271_s12  ;;  %v757_v55 = vand.u32 4294901760, %v719_v54  ;;  %vm3086_vm3 = vcmask 523264   ;;  %s3290_s18 = sshll.u32 %s3423_s27, 5 }
  0x2b   : > { %3291 = vmatpush.msra.mxu2 %v481_v10  ;;  %v533_v12 = vsub.f32 %v453_v8, %v481_v10  ;;  %v539_v13 = vsub.f32 %v452_v9, %v483_v11  ;;  %v450_v14 = vld [vmem:[%s3549_s15 + $0x10] sm:$0xff]  ;;  %482 = vmatpush.msra.mxu0 %v481_v10  ;;  %v451_v15 = vld [vmem:[%s3549_s15 + $0x18] sm:$0xff]  ;;  %v448_v16 = vld [vmem:[%s3549_s15] sm:$0xff]  ;;  %v807_v50 = vsub.f32 %v721_v48, %v755_v49  ;;  %s3104_s21 = scalar_lea.hbm %s4467_s7, %s3290_s18  ;;  %s3092_s27 = scalar_lea.sflag [#allocation4], %s3546_s10 }
  0x2c   : > { %v462_v17 = vsel %vm454_vm0, %v450_v14, 0  ;;  %v465_v18 = vsel %vm454_vm0, %v451_v15, 0  ;;  %v456_v19 = vsel %vm454_vm0, %v448_v16, 0  ;;  %v449_v20 = vld [vmem:[%s3549_s15 + $0x8] sm:$0xff]  ;;  %v813_v56 = vsub.f32 %v719_v54, %v757_v55  ;;  %s3107_s23 = sshll.u32 %s3104_s21, 4  ;;  %s3108_s23 = int_to_ptr.hbm [resolvable:$true] %s3107_s23 }
  0x2d   : > { %v534_v21 = vand.u32 4294901760, %v533_v12  ;;  %3292 = vmatpush.msra.mxu2 %v483_v11  ;;  %v540_v22 = vand.u32 4294901760, %v539_v13  ;;  %v501_v23 = vand.u32 4294901760, %v462_v17  ;;  %v509_v24 = vand.u32 4294901760, %v465_v18  ;;  %484 = vmatpush.msra.mxu0 %v483_v11  ;;  %s3367_s30 = sshra.s32 %s3108_s23, 4  ;;  %s3368_s30 = int_to_ptr.hbm [resolvable:$true] %s3367_s30 }
  0x2e   : > { %v485_v25 = vand.u32 4294901760, %v456_v19  ;;  %v459_v26 = vsel %vm454_vm0, %v449_v20, 0  ;;  %v808_v51 = vand.u32 4294901760, %v807_v50  ;;  %v814_v57 = vand.u32 4294901760, %v813_v56  ;;  %s3369_s8 = scalar_lea.hbm %s3368_s30, 32  ;;  %p3374_p3 = scmp.lt.s32.totalorder %s3368_s30, %s4467_s7 }
  0x2f   : > { %577 = vmatpush.msrb.mxu2 %v533_v12  ;;  %v535_v27 = vsub.f32 %v533_v12, %v534_v21  ;;  %v541_v28 = vsub.f32 %v539_v13, %v540_v22  ;;  %v502_v29 = vsub.f32 %v462_v17, %v501_v23  ;;  %v510_v30 = vsub.f32 %v465_v18, %v509_v24  ;;  %p3370_p0 = scmp.ne.s32.totalorder %s3368_s30, %s3369_s8 }
  0x30   : > { %662 = vmatpush.msrb.mxu0 %v534_v21  ;;  %v486_v31 = vsub.f32 %v456_v19, %v485_v25  ;;  %v493_v32 = vand.u32 4294901760, %v459_v26  ;;  %v809_v52 = vsub.f32 %v807_v50, %v808_v51  ;;  %v815_v58 = vsub.f32 %v813_v56, %v814_v57 }
  0x31   : > { %580 = vmatpush.msrb.mxu2 %v539_v13  ;;  %v536_v33 = vand.u32 4294901760, %v535_v27  ;;  %v542_v34 = vand.u32 4294901760, %v541_v28  ;;  %v503_v35 = vand.u32 4294901760, %v502_v29  ;;  %v511_v39 = vand.u32 4294901760, %v510_v30  ;;  %v720_v13 = vld [vmem:[%s4463_s3 + $0x8] sm:$0xff]  ;;  %p3371_p1 = pnand %p3370_p0, %p3514_p5 }
  0x32   : > { %666 = vmatpush.msrb.mxu0 %v540_v22  ;;  %v487_v36 = vand.u32 4294901760, %v486_v31  ;;  %v494_v37 = vsub.f32 %v459_v26, %v493_v32  ;;  %v810_v53 = vand.u32 4294901760, %v809_v52  ;;  %v816_v59 = vand.u32 4294901760, %v815_v58 }
  0x33   : > { %3293 = vmatpush.msra.mxu3 %v536_v33  ;;  %v504_v38 = vsub.f32 %v502_v29, %v503_v35  ;;  %537 = vmatpush.msra.mxu1 %v536_v33  ;;  %v512_v44 = vsub.f32 %v510_v30, %v511_v39  ;;  %v1009_v16 = vand.u32 4294901760, %v720_v13  ;;  %p3372_p2 = pneg %p3371_p1 }
  0x34   : > { %v488_v40 = vsub.f32 %v486_v31, %v487_v36  ;;  %v495_v41 = vand.u32 4294901760, %v494_v37 }
  0x35   : > { %3294 = vmatpush.msra.mxu3 %v542_v34  ;;  %v505_v42 = vand.u32 4294901760, %v504_v38  ;;  %543 = vmatpush.msra.mxu1 %v542_v34  ;;  %v513_v46 = vand.u32 4294901760, %v512_v44  ;;  %v1065_v22 = vsub.f32 %v720_v13, %v1009_v16 }
  0x36   : > { %553 = vmatmul.f32.vlgmr.msra.gmra.mxu3 %v501_v23  ;;  %v489_v43 = vand.u32 4294901760, %v488_v40  ;;  %545 = vmatmul.f32.vlgmr.msra.gmra.mxu1 %v485_v25  ;;  %v496_v45 = vsub.f32 %v494_v37, %v495_v41 }
  0x37   : > { %506 = vmatmul.f32.vlgmr.msra.gmra.mxu2 %v505_v42  ;;  %617 = vmatpush.msrb.mxu3 %v481_v10  ;;  %v1066_v28 = vand.u32 4294901760, %v1065_v22 }
  0x38   : > { %490 = vmatmul.f32.vlgmr.msra.gmra.mxu0 %v489_v43  ;;  %699 = vmatpush.msrb.mxu1 %v481_v10  ;;  %v497_v47 = vand.u32 4294901760, %v496_v45  ;;  %v722_v10 = vld [vmem:[%s4463_s3 + $0x18] sm:$0xff] }
  0x39   : > { %619 = vmatpush.msrb.mxu3 %v483_v11  ;;  %756 = vmatpush.msra.mxu2 %v755_v49  ;;  %v1007_v12 = vand.u32 4294901760, %v722_v10 }
  0x3a   : > { %701 = vmatpush.msrb.mxu1 %v483_v11  ;;  %851 = vmatpush.msra.mxu0 %v807_v50 }
  0x3b   : > { %811 = vmatpush.msra.mxu3 %v810_v53  ;;  %758 = vmatpush.msra.mxu2 %v757_v55  ;;  %v1059_v15 = vsub.f32 %v722_v10, %v1007_v12 }
  0x3c   : > { %891 = vmatpush.msra.mxu1 %v755_v49  ;;  %854 = vmatpush.msra.mxu0 %v813_v56 }
  0x3d   : > { %817 = vmatpush.msra.mxu3 %v816_v59  ;;  %v1060_v21 = vand.u32 4294901760, %v1059_v15 }
  0x3e   : > { %557 = vmatmul.f32.gmra.mxu3 %v509_v24  ;;  %549 = vmatmul.f32.gmra.mxu1 %v493_v32 }
  0x3f   : > { %514 = vmatmul.f32.gmra.mxu2 %v513_v46  ;;  %893 = vmatpush.msra.mxu1 %v757_v55  ;;  %v1061_v27 = vsub.f32 %v1059_v15, %v1060_v21 }
  0x40   : > { %498 = vmatmul.f32.gmra.mxu0 %v497_v47 }
  0x46   : > { %623 = vmatmul.f32.vlgmr.msrb.gmra.mxu3 %v487_v36  ;;  %703 = vmatmul.f32.vlgmr.msrb.gmra.mxu1 %v485_v25 }
  0x47   : > { %583 = vmatmul.f32.vlgmr.msrb.gmra.mxu2 %v486_v31  ;;  %973 = vmatpush.msrb.mxu3 %v755_v49  ;;  %v1062_v31 = vand.u32 4294901760, %v1061_v27  ;;  %v3274_v27 = vld [vmem:[%s3549_s15 + $0x28] sm:$0xff] }
  0x48   : > { %668 = vmatmul.f32.vlgmr.msrb.gmra.mxu0 %v485_v25  ;;  %936 = vmatpush.msrb.mxu2 %v808_v51 }
  0x49   : > { %975 = vmatpush.msrb.mxu3 %v757_v55  ;;  %1008 = vmatpush.msrb.mxu0 %v1007_v12 }
  0x4a   : > { %940 = vmatpush.msrb.mxu2 %v814_v57  ;;  %1063 = vmatpush.msrb.mxu1 %v1062_v31 }
  0x4b   : > { %1010 = vmatpush.msrb.mxu0 %v1009_v16 }
  0x4e   : > { %629 = vmatmul.f32.gmra.mxu3 %v495_v41  ;;  %707 = vmatmul.f32.gmra.mxu1 %v493_v32 }
  0x4f   : > { %588 = vmatmul.f32.gmra.mxu2 %v494_v37 }
  0x50   : > { %672 = vmatmul.f32.gmra.mxu0 %v493_v32  ;;  %v1067_v32 = vsub.f32 %v1065_v22, %v1066_v28 }
  0x56   : > { %635 = vmatmul.f32.gmra.mxu3 %v503_v35  ;;  %711 = vmatmul.f32.gmra.mxu1 %v501_v23  ;;  %v1068_v35 = vand.u32 4294901760, %v1067_v32  ;;  %v3275_v32 = vld [vmem:[%s3549_s15 + $0x30] sm:$0xff] }
  0x57   : > { %593 = vmatmul.f32.gmra.mxu2 %v502_v29 }
  0x58   : > { %676 = vmatmul.f32.gmra.mxu0 %v501_v23  ;;  %1069 = vmatpush.msrb.mxu1 %v1068_v35  ;;  %v1260_v35 = vsel %vm454_vm0, %v3275_v32, 0 }
  0x5e   : > { %641 = vmatmul.f32.gmra.mxu3 %v511_v39  ;;  %715 = vmatmul.f32.gmra.mxu1 %v509_v24 }
  0x5f   : > { %598 = vmatmul.f32.gmra.mxu2 %v510_v30 }
  0x60   : > { %680 = vmatmul.f32.gmra.mxu0 %v509_v24 }
  0xb3   : > { %v546_v61 = vpop.f32.mrf.mxu1 }
  0xb5   : > { %v491_v60 = vpop.f32.mrf.mxu0 }
  0xb6   : > { %v547_v6 = vadd.f32 %v546_v61, %v491_v60 }
  0xb9   : > { %v554_v62 = vpop.f32.mrf.mxu3 }
  0xba   : > { %v507_v63 = vpop.f32.mrf.mxu2 }
  0xbb   : > { %v550_v1 = vpop.f32.mrf.mxu1  ;;  %v555_v37 = vadd.f32 %v554_v62, %v507_v63 }
  0xbd   : > { %v499_v0 = vpop.f32.mrf.mxu0 }
  0xbe   : > { %v551_v18 = vadd.f32 %v550_v1, %v499_v0 }
  0xc1   : > { %v3565_v2 = vpop.f32.mrf.mxu3 }
  0xc2   : > { %v3567_v3 = vpop.f32.mrf.mxu2 }
  0xc3   : > { %v704_v5 = vpop.f32.mrf.mxu1  ;;  %v559_v52 = vadd.f32 %v3565_v2, %v3567_v3 }
  0xc5   : > { %v669_v4 = vpop.f32.mrf.mxu0 }
  0xc9   : > { %v624_v7 = vpop.f32.mrf.mxu3 }
  0xca   : > { %v584_v8 = vpop.f32.mrf.mxu2 }
  0xcb   : > { %v585_v9 = vadd.f32 %v584_v8, %v547_v6  ;;  %v708_v24 = vpop.f32.mrf.mxu1 }
  0xcd   : > { %v625_v11 = vadd.f32 %v624_v7, %v585_v9  ;;  %v673_v17 = vpop.f32.mrf.mxu0 }
  0xcf   : > { %v670_v14 = vadd.f32 %v669_v4, %v625_v11 }
  0xd1   : > { %v705_v19 = vadd.f32 %v704_v5, %v670_v14  ;;  %v630_v20 = vpop.f32.mrf.mxu3 }
  0xd2   : > { %v589_v23 = vpop.f32.mrf.mxu2 }
  0xd3   : > { %v730_v25 = vsel %vm454_vm0, %v705_v19, 0  ;;  %v590_v26 = vadd.f32 %v589_v23, %v551_v18  ;;  %v712_v47 = vpop.f32.mrf.mxu1  ;;  %v3277_v18 = vld [vmem:[%s4461_s1 + $0x10] sm:$0xff] }
  0xd4   : > { %v3576_v29 = vand.u32 4294901760, %v730_v25  ;;  %v1281_v19 = vand.u32 4294901760, %v3277_v18 }
  0xd5   : > { %v631_v30 = vadd.f32 %v630_v20, %v590_v26  ;;  %v677_v41 = vpop.f32.mrf.mxu0 }
  0xd6   : > { %v3579_v33 = vsub.f32 %v730_v25, %v3576_v29  ;;  %819 = vmatmul.f32.vlgmr.msra.gmra.mxu3 %v3576_v29  ;;  %v1337_v20 = vsub.f32 %v3277_v18, %v1281_v19 }
  0xd7   : > { %v674_v34 = vadd.f32 %v673_v17, %v631_v30  ;;  %1143 = vmatpush.msra.mxu3 %v1007_v12 }
  0xd8   : > { %857 = vmatmul.f32.vlgmr.msra.gmra.mxu0 %v3579_v33  ;;  %v3584_v36 = vand.u32 4294901760, %v3579_v33 }
  0xd9   : > { %v709_v38 = vadd.f32 %v708_v24, %v674_v34  ;;  %v636_v39 = vpop.f32.mrf.mxu3  ;;  %1145 = vmatpush.msra.mxu3 %v1009_v16  ;;  %1188 = vmatpush.msra.mxu0 %v1060_v21  ;;  %v1338_v21 = vand.u32 4294901760, %v1337_v20  ;;  %v3273_v24 = vld [vmem:[%s3549_s15 + $0x20] sm:$0xff] }
  0xda   : > { %v594_v40 = vpop.f32.mrf.mxu2  ;;  %897 = vmatmul.f32.vlgmr.msra.gmra.mxu1 %v3584_v36  ;;  %v762_v42 = vsub.f32 %v3579_v33, %v3584_v36  ;;  %v1254_v25 = vsel %vm454_vm0, %v3273_v24, 0 }
  0xdb   : > { %v733_v43 = vsel %vm454_vm0, %v709_v38, 0  ;;  %v595_v44 = vadd.f32 %v594_v40, %v555_v37  ;;  %1225 = vmatpush.msra.mxu1 %v1007_v12  ;;  %1192 = vmatpush.msra.mxu0 %v1066_v28  ;;  %v716_v0 = vpop.f32.mrf.mxu1  ;;  %v3278_v12 = vld [vmem:[%s4461_s1 + $0x18] sm:$0xff]  ;;  %v1283_v26 = vand.u32 4294901760, %v1254_v25  ;;  %v1299_v38 = vand.u32 4294901760, %v1260_v35 }
  0xdc   : > { %v3590_v45 = vand.u32 4294901760, %v733_v43  ;;  %v763_v46 = vand.u32 4294901760, %v762_v42  ;;  %v1279_v13 = vand.u32 4294901760, %v3278_v12 }
  0xdd   : > { %v637_v48 = vadd.f32 %v636_v39, %v595_v44  ;;  %1227 = vmatpush.msra.mxu1 %v1009_v16  ;;  %v681_v60 = vpop.f32.mrf.mxu0  ;;  %v1284_v28 = vsub.f32 %v1254_v25, %v1283_v26  ;;  %v3276_v39 = vld [vmem:[%s3549_s15 + $0x38] sm:$0xff]  ;;  %s3272_s15 = sshll.u32 %s3546_s10, 5 }
  0xde   : > { %v3593_v49 = vsub.f32 %v733_v43, %v3590_v45  ;;  %764 = vmatmul.f32.vlgmr.msra.gmra.mxu2 %v763_v46  ;;  %823 = vmatmul.f32.gmra.mxu3 %v3590_v45  ;;  %v1331_v14 = vsub.f32 %v3278_v12, %v1279_v13  ;;  %v1263_v42 = vsel %vm454_vm0, %v3276_v39, 0  ;;  %v3279_v39 = vld [vmem:[%s4463_s3 + $0x20] sm:$0xff]  ;;  %s4411_s17 = scalar_lea.vmem [#allocation3], %s3272_s15  ;;  %s3373_s15 = scalar_lea.hbm %s4467_s7, 64 }
  0xdf   : > { %v678_v50 = vadd.f32 %v677_v41, %v637_v48  ;;  %1103 = vmatpush.msra.mxu2 %v1059_v15  ;;  %v1285_v30 = vand.u32 4294901760, %v1284_v28  ;;  %v1300_v41 = vsub.f32 %v1260_v35, %v1299_v38  ;;  %s3105_s22 = sshll.u32 %s4411_s17, 4  ;;  %p3375_p4 = scmp.lt.s32.totalorder %s3373_s15, %s3369_s8  ;;  %s3106_s22 = int_to_ptr.vmem [resolvable:$true] %s3105_s22 }
  0xe0   : > { %862 = vmatmul.f32.gmra.mxu0 %v3593_v49  ;;  %v3598_v51 = vand.u32 4294901760, %v3593_v49  ;;  %v1332_v15 = vand.u32 4294901760, %v1331_v14 }
  0xe1   : > { %v713_v53 = vadd.f32 %v712_v47, %v678_v50  ;;  %1106 = vmatpush.msra.mxu2 %v1065_v22  ;;  %v642_v55 = vpop.f32.mrf.mxu3  ;;  %v1339_v22 = vsub.f32 %v1337_v20, %v1338_v21  ;;  %v1301_v44 = vand.u32 4294901760, %v1300_v41  ;;  %p3376_p6 = por %p3375_p4, %p3374_p3 }
  0xe2   : > { %v599_v54 = vpop.f32.mrf.mxu2  ;;  %903 = vmatmul.f32.gmra.mxu1 %v3598_v51  ;;  %v770_v56 = vsub.f32 %v3593_v49, %v3598_v51  ;;  %v1333_v16 = vsub.f32 %v1331_v14, %v1332_v15 }
  0xe3   : > { %v736_v57 = vsel %vm454_vm0, %v713_v53, 0  ;;  %v600_v58 = vadd.f32 %v599_v54, %v559_v52  ;;  %v1340_v23 = vand.u32 4294901760, %v1339_v22  ;;  %p3377_p7 = pnand %p3376_p6, %p3372_p2 }
  0xe4   : > { %v3606_v59 = vand.u32 4294901760, %v736_v57  ;;  %v771_v61 = vand.u32 4294901760, %v770_v56  ;;  %v1334_v17 = vand.u32 4294901760, %v1333_v16 }
  0xe5   : > { %v643_v62 = vadd.f32 %v642_v55, %v600_v58 }
  0xe6   : > { %v3609_v63 = vsub.f32 %v736_v57, %v3606_v59  ;;  %772 = vmatmul.f32.gmra.mxu2 %v771_v61  ;;  %827 = vmatmul.f32.gmra.mxu3 %v3606_v59 }
  0xe7   : > { %v682_v1 = vadd.f32 %v681_v60, %v643_v62 }
  0xe8   : > { %867 = vmatmul.f32.gmra.mxu0 %v3609_v63  ;;  %v3614_v2 = vand.u32 4294901760, %v3609_v63 }
  0xe9   : > { %v717_v3 = vadd.f32 %v716_v0, %v682_v1 }
  0xea   : > { %909 = vmatmul.f32.gmra.mxu1 %v3614_v2  ;;  %v778_v4 = vsub.f32 %v3609_v63, %v3614_v2 }
  0xeb   : > { %v739_v5 = vsel %vm454_vm0, %v717_v3, 0 }
  0xec   : > { %v3620_v6 = vand.u32 4294901760, %v739_v5  ;;  %v779_v7 = vand.u32 4294901760, %v778_v4 }
  0xee   : > { %v3623_v8 = vsub.f32 %v739_v5, %v3620_v6  ;;  %780 = vmatmul.f32.gmra.mxu2 %v779_v7  ;;  %831 = vmatmul.f32.gmra.mxu3 %v3620_v6 }
  0xf0   : > { %872 = vmatmul.f32.gmra.mxu0 %v3623_v8  ;;  %v785_v9 = vand.u32 4294901760, %v3623_v8 }
  0xf2   : > { %915 = vmatmul.f32.gmra.mxu1 %v785_v9  ;;  %v786_v10 = vsub.f32 %v3623_v8, %v785_v9 }
  0xf4   : > { %v787_v11 = vand.u32 4294901760, %v786_v10 }
  0xf6   : > { %788 = vmatmul.f32.gmra.mxu2 %v787_v11  ;;  %977 = vmatmul.f32.vlgmr.msrb.gmra.mxu3 %v3576_v29 }
  0xf7   : > { %1335 = vmatpush.msrb.mxu3 %v1334_v17 }
  0xf8   : > { %1016 = vmatmul.f32.vlgmr.msrb.gmra.mxu0 %v763_v46  ;;  %v1302_v46 = vsub.f32 %v1300_v41, %v1301_v44 }
  0xf9   : > { %1375 = vmatpush.msrb.mxu0 %v1331_v14  ;;  %1341 = vmatpush.msrb.mxu3 %v1340_v23 }
  0xfa   : > { %1071 = vmatmul.f32.vlgmr.msrb.gmra.mxu1 %v3576_v29  ;;  %v1303_v48 = vand.u32 4294901760, %v1302_v46 }
  0xfb   : > { %1415 = vmatpush.msrb.mxu1 %v1279_v13  ;;  %1378 = vmatpush.msrb.mxu0 %v1337_v20 }
  0xfd   : > { %1417 = vmatpush.msrb.mxu1 %v1281_v19 }
  0xfe   : > { %942 = vmatmul.f32.vlgmr.msrb.gmra.mxu2 %v3576_v29  ;;  %981 = vmatmul.f32.gmra.mxu3 %v3590_v45 }
  0xff   : > { %1280 = vmatpush.msrb.mxu2 %v1279_v13 }
 0x100   : > { %1024 = vmatmul.f32.gmra.mxu0 %v771_v61 }
 0x101   : > { %1282 = vmatpush.msrb.mxu2 %v1281_v19 }
 0x102   : > { %1075 = vmatmul.f32.gmra.mxu1 %v3590_v45 }
 0x106   : > { %946 = vmatmul.f32.gmra.mxu2 %v3590_v45  ;;  %985 = vmatmul.f32.gmra.mxu3 %v3606_v59 }
 0x108   : > { %1032 = vmatmul.f32.gmra.mxu0 %v779_v7 }
 0x10a   : > { %1079 = vmatmul.f32.gmra.mxu1 %v3606_v59 }
 0x10e   : > { %950 = vmatmul.f32.gmra.mxu2 %v3606_v59  ;;  %989 = vmatmul.f32.gmra.mxu3 %v3620_v6 }
 0x110   : > { %1040 = vmatmul.f32.gmra.mxu0 %v787_v11 }
 0x112   : > { %1083 = vmatmul.f32.gmra.mxu1 %v3620_v6 }
 0x116   : > { %954 = vmatmul.f32.gmra.mxu2 %v3620_v6  ;;  %1149 = vmatmul.f32.vlgmr.msra.gmra.mxu3 %v3584_v36 }
 0x117   : > { %1497 = vmatpush.msra.mxu3 %v1279_v13 }
 0x118   : > { %1194 = vmatmul.f32.vlgmr.msra.gmra.mxu0 %v3576_v29 }
 0x119   : > { %1499 = vmatpush.msra.mxu3 %v1281_v19 }
 0x11a   : > { %1229 = vmatmul.f32.vlgmr.msra.gmra.mxu1 %v3576_v29  ;;  %v1257_v29 = vsel %vm454_vm0, %v3274_v27, 0 }
 0x11b   : > { %v1291_v31 = vand.u32 4294901760, %v1257_v29 }
 0x11d   : > { %v1292_v34 = vsub.f32 %v1257_v29, %v1291_v31 }
 0x11e   : > { %1109 = vmatmul.f32.vlgmr.msra.gmra.mxu2 %v3579_v33  ;;  %1155 = vmatmul.f32.gmra.mxu3 %v3598_v51  ;;  %v1286_v33 = vsub.f32 %v1284_v28, %v1285_v30 }
 0x11f   : > { %1460 = vmatpush.msra.mxu2 %v1332_v15  ;;  %v1293_v37 = vand.u32 4294901760, %v1292_v34 }
 0x120   : > { %1198 = vmatmul.f32.gmra.mxu0 %v3590_v45  ;;  %v1287_v36 = vand.u32 4294901760, %v1286_v33 }
 0x121   : > { %1464 = vmatpush.msra.mxu2 %v1338_v21  ;;  %v1294_v40 = vsub.f32 %v1292_v34, %v1293_v37 }
 0x122   : > { %1233 = vmatmul.f32.gmra.mxu1 %v3590_v45  ;;  %v1307_v45 = vand.u32 4294901760, %v1263_v42 }
 0x123   : > { %v1295_v43 = vand.u32 4294901760, %v1294_v40  ;;  %v1557_v40 = vand.u32 4294901760, %v3279_v39 }
 0x124   : > { %v1308_v47 = vsub.f32 %v1263_v42, %v1307_v45 }
 0x125   : > { %v1613_v42 = vsub.f32 %v3279_v39, %v1557_v40 }
 0x126   : > { %1114 = vmatmul.f32.gmra.mxu2 %v3593_v49  ;;  %1161 = vmatmul.f32.gmra.mxu3 %v3614_v2  ;;  %v1309_v49 = vand.u32 4294901760, %v1308_v47 }
 0x128   : > { %1202 = vmatmul.f32.gmra.mxu0 %v3606_v59  ;;  %v1310_v50 = vsub.f32 %v1308_v47, %v1309_v49 }
 0x12a   : > { %1237 = vmatmul.f32.gmra.mxu1 %v3606_v59  ;;  %v1311_v51 = vand.u32 4294901760, %v1310_v50 }
 0x12e   : > { %1119 = vmatmul.f32.gmra.mxu2 %v3609_v63  ;;  %1167 = vmatmul.f32.gmra.mxu3 %v785_v9 }
 0x130   : > { %1206 = vmatmul.f32.gmra.mxu0 %v3620_v6 }
 0x132   : > { %1241 = vmatmul.f32.gmra.mxu1 %v3620_v6 }
 0x136   : > { %1124 = vmatmul.f32.gmra.mxu2 %v3623_v8  ;;  %1343 = vmatmul.f32.vlgmr.msrb.gmra.mxu3 %v1283_v26 }
 0x138   : > { %1381 = vmatmul.f32.vlgmr.msrb.gmra.mxu0 %v1284_v28 }
 0x13a   : > { %1421 = vmatmul.f32.vlgmr.msrb.gmra.mxu1 %v1285_v30 }
 0x13e   : > { %1288 = vmatmul.f32.vlgmr.msrb.gmra.mxu2 %v1287_v36  ;;  %1347 = vmatmul.f32.gmra.mxu3 %v1291_v31 }
 0x140   : > { %1386 = vmatmul.f32.gmra.mxu0 %v1292_v34 }
 0x142   : > { %1427 = vmatmul.f32.gmra.mxu1 %v1293_v37 }
 0x146   : > { %1296 = vmatmul.f32.gmra.mxu2 %v1295_v43  ;;  %1351 = vmatmul.f32.gmra.mxu3 %v1299_v38 }
 0x148   : > { %1391 = vmatmul.f32.gmra.mxu0 %v1300_v41 }
 0x14a   : > { %1433 = vmatmul.f32.gmra.mxu1 %v1301_v44 }
 0x14e   : > { %1304 = vmatmul.f32.gmra.mxu2 %v1303_v48  ;;  %1355 = vmatmul.f32.gmra.mxu3 %v1307_v45 }
 0x150   : > { %1396 = vmatmul.f32.gmra.mxu0 %v1308_v47 }
 0x152   : > { %1439 = vmatmul.f32.gmra.mxu1 %v1309_v49 }
 0x155   : > { %v3672_v53 = vpop.f32.mrf.mxu0 }
 0x156   : > { %1312 = vmatmul.f32.gmra.mxu2 %v1311_v51  ;;  %1501 = vmatmul.f32.vlgmr.msra.gmra.mxu3 %v1283_v26 }
 0x157   : > { %v3674_v54 = vpop.f32.mrf.mxu1 }
 0x159   : > { %v3670_v52 = vpop.f32.mrf.mxu3 }
 0x15d   : > { %v3680_v57 = vpop.f32.mrf.mxu0 }
 0x15e   : > { %1466 = vmatmul.f32.vlgmr.msra.gmra.mxu2 %v1283_v26  ;;  %1505 = vmatmul.f32.gmra.mxu3 %v1291_v31  ;;  %v3281_v26 = vld [vmem:[%s4463_s3 + $0x30] sm:$0xff] }
 0x15f   : > { %v3686_v60 = vpop.f32.mrf.mxu1  ;;  %v1555_v27 = vand.u32 4294901760, %v3281_v26 }
 0x161   : > { %v3676_v55 = vpop.f32.mrf.mxu2  ;;  %v3678_v56 = vpop.f32.mrf.mxu3  ;;  %1556 = vmatpush.msra.mxu0 %v1555_v27  ;;  %1691 = vmatpush.msrb.mxu3 %v1555_v27 }
 0x163   : > { %1558 = vmatpush.msra.mxu0 %v1557_v40  ;;  %1693 = vmatpush.msrb.mxu3 %v1557_v40 }
 0x165   : > { %v3688_v61 = vpop.f32.mrf.mxu0 }
 0x166   : > { %1470 = vmatmul.f32.gmra.mxu2 %v1291_v31  ;;  %1509 = vmatmul.f32.gmra.mxu3 %v1299_v38  ;;  %v1607_v31 = vsub.f32 %v3281_v26, %v1555_v27 }
 0x167   : > { %v3694_v0 = vpop.f32.mrf.mxu1 }
 0x168   : > { %4487 = vst [vmem:[#allocation7_spill] sm:$0xff] %v3694_v0  ;;  %1651 = vmatpush.msrb.mxu2 %v1607_v31  ;;  %v1608_v32 = vand.u32 4294901760, %v1607_v31 }
 0x169   : > { %v3682_v58 = vpop.f32.mrf.mxu2  ;;  %v3684_v59 = vpop.f32.mrf.mxu3 }
 0x16a   : > { %v1609_v34 = vsub.f32 %v1607_v31, %v1608_v32  ;;  %1736 = vmatpush.msrb.mxu0 %v1608_v32  ;;  %1654 = vmatpush.msrb.mxu2 %v1613_v42  ;;  %v3282_v32 = vld [vmem:[%s4463_s3 + $0x38] sm:$0xff] }
 0x16c   : > { %v1610_v35 = vand.u32 4294901760, %v1609_v34  ;;  %v1807_v34 = vand.u32 4294901760, %v3282_v32 }
 0x16d   : > { %v3700_v3 = vpop.f32.mrf.mxu0 }
 0x16e   : > { %1474 = vmatmul.f32.gmra.mxu2 %v1299_v38  ;;  %1513 = vmatmul.f32.gmra.mxu3 %v1307_v45  ;;  %4488 = vst [vmem:[#allocation8_spill] sm:$0xff] %v3700_v3 }
 0x16f   : > { %v3702_v4 = vpop.f32.mrf.mxu1  ;;  %1611 = vmatpush.msra.mxu1 %v1610_v35  ;;  %1808 = vmatpush.msra.mxu2 %v1807_v34 }
 0x170   : > { %4489 = vst [vmem:[#allocation9_spill] sm:$0xff] %v3702_v4 }
 0x171   : > { %v3690_v62 = vpop.f32.mrf.mxu2  ;;  %v3692_v63 = vpop.f32.mrf.mxu3 }
 0x172   : > { %4486 = vst [vmem:[#allocation6_spill] sm:$0xff] %v3692_v63 }
 0x175   : > { %v3708_v7 = vpop.f32.mrf.mxu0 }
 0x176   : > { %1478 = vmatmul.f32.gmra.mxu2 %v1307_v45  ;;  %4490 = vst [vmem:[#allocation10_spill] sm:$0xff] %v3708_v7  ;;  %v1614_v45 = vand.u32 4294901760, %v1613_v42 }
 0x177   : > { %v3710_v8 = vpop.f32.mrf.mxu1 }
 0x178   : > { %4491 = vst [vmem:[#allocation11_spill] sm:$0xff] %v3710_v8  ;;  %v1615_v46 = vsub.f32 %v1613_v42, %v1614_v45  ;;  %1740 = vmatpush.msrb.mxu0 %v1614_v45  ;;  %v1859_v42 = vsub.f32 %v3282_v32, %v1807_v34 }
 0x179   : > { %v3696_v1 = vpop.f32.mrf.mxu2  ;;  %v3698_v2 = vpop.f32.mrf.mxu3 }
 0x17a   : > { %v1616_v48 = vand.u32 4294901760, %v1615_v46  ;;  %v1860_v45 = vand.u32 4294901760, %v1859_v42 }
 0x17c   : > { %1617 = vmatpush.msra.mxu1 %v1616_v48 }
 0x17d   : > { %v3716_v11 = vpop.f32.mrf.mxu0 }
 0x17e   : > { %4493 = vst [vmem:[#allocation13_spill] sm:$0xff] %v3716_v11  ;;  %1773 = vmatpush.msrb.mxu1 %v1555_v27  ;;  %v2054_v11 = vld [vmem:[%s4464_s4 + $0x8] sm:$0xff] }
 0x17f   : > { %v3722_v14 = vpop.f32.mrf.mxu1 }
 0x180   : > { %4496 = vst [vmem:[#allocation16_spill] sm:$0xff] %v3722_v14  ;;  %1775 = vmatpush.msrb.mxu1 %v1557_v40 }
 0x181   : > { %v3704_v5 = vpop.f32.mrf.mxu2  ;;  %v3706_v6 = vpop.f32.mrf.mxu3 }
 0x185   : > { %v3724_v15 = vpop.f32.mrf.mxu0 }
 0x186   : > { %4497 = vst [vmem:[#allocation17_spill] sm:$0xff] %v3724_v15 }
 0x187   : > { %v3730_v18 = vpop.f32.mrf.mxu1 }
 0x188   : > { %4500 = vst [vmem:[#allocation20_spill] sm:$0xff] %v3730_v18 }
 0x189   : > { %v3712_v9 = vpop.f32.mrf.mxu2  ;;  %v3714_v10 = vpop.f32.mrf.mxu3 }
 0x18a   : > { %4492 = vst [vmem:[#allocation12_spill] sm:$0xff] %v3714_v10 }
 0x18d   : > { %v3736_v21 = vpop.f32.mrf.mxu0 }
 0x18e   : > { %4503 = vst [vmem:[#allocation23_spill] sm:$0xff] %v3736_v21 }
 0x18f   : > { %v3738_v22 = vpop.f32.mrf.mxu1 }
 0x190   : > { %4504 = vst [vmem:[#allocation24_spill] sm:$0xff] %v3738_v22 }
 0x191   : > { %v3718_v12 = vpop.f32.mrf.mxu2  ;;  %v3720_v13 = vpop.f32.mrf.mxu3 }
 0x192   : > { %4494 = vst [vmem:[#allocation14_spill] sm:$0xff] %v3718_v12 }
 0x193   : > { %4495 = vst [vmem:[#allocation15_spill] sm:$0xff] %v3720_v13 }
 0x195   : > { %v3744_v25 = vpop.f32.mrf.mxu0 }
 0x196   : > { %4507 = vst [vmem:[#allocation27_spill] sm:$0xff] %v3744_v25 }
 0x197   : > { %v3749_v28 = vpop.f32.mrf.mxu1 }
 0x198   : > { %4508 = vst [vmem:[#allocation28_spill] sm:$0xff] %v3749_v28 }
 0x199   : > { %v3726_v16 = vpop.f32.mrf.mxu2  ;;  %v3728_v17 = vpop.f32.mrf.mxu3 }
 0x19a   : > { %4498 = vst [vmem:[#allocation18_spill] sm:$0xff] %v3726_v16 }
 0x19b   : > { %4499 = vst [vmem:[#allocation19_spill] sm:$0xff] %v3728_v17 }
 0x19d   : > { %v3755_v33 = vpop.f32.mrf.mxu0 }
 0x19e   : > { %4511 = vst [vmem:[#allocation31_spill] sm:$0xff] %v3755_v33 }
 0x19f   : > { %v3759_v38 = vpop.f32.mrf.mxu1 }
 0x1a0   : > { %4513 = vst [vmem:[#allocation33_spill] sm:$0xff] %v3759_v38 }
 0x1a1   : > { %v3732_v19 = vpop.f32.mrf.mxu2  ;;  %v3734_v20 = vpop.f32.mrf.mxu3 }
 0x1a2   : > { %4501 = vst [vmem:[#allocation21_spill] sm:$0xff] %v3732_v19 }
 0x1a3   : > { %4502 = vst [vmem:[#allocation22_spill] sm:$0xff] %v3734_v20 }
 0x1a5   : > { %v3764_v41 = vpop.f32.mrf.mxu0 }
 0x1a6   : > { %4514 = vst [vmem:[#allocation34_spill] sm:$0xff] %v3764_v41 }
 0x1a7   : > { %v3766_v47 = vpop.f32.mrf.mxu1 }
 0x1a8   : > { %4515 = vst [vmem:[#allocation35_spill] sm:$0xff] %v3766_v47  ;;  %v1861_v47 = vsub.f32 %v1859_v42, %v1860_v45 }
 0x1a9   : > { %v3740_v23 = vpop.f32.mrf.mxu2  ;;  %v3742_v24 = vpop.f32.mrf.mxu3 }
 0x1aa   : > { %4505 = vst [vmem:[#allocation25_spill] sm:$0xff] %v3740_v23 }
 0x1ab   : > { %4506 = vst [vmem:[#allocation26_spill] sm:$0xff] %v3742_v24  ;;  %v3280_v24 = vld [vmem:[%s4463_s3 + $0x28] sm:$0xff] }
 0x1ac   : > { %v1809_v32 = vand.u32 4294901760, %v3280_v24 }
 0x1ad   : > { %v3768_v51 = vpop.f32.mrf.mxu0 }
 0x1ae   : > { %4516 = vst [vmem:[#allocation36_spill] sm:$0xff] %v3768_v51  ;;  %1810 = vmatpush.msra.mxu2 %v1809_v32 }
 0x1af   : > { %v3770_v26 = vpop.f32.mrf.mxu1 }
 0x1b0   : > { %4517 = vst [vmem:[#allocation37_spill] sm:$0xff] %v3770_v26 }
 0x1b1   : > { %v3751_v29 = vpop.f32.mrf.mxu2  ;;  %v3753_v30 = vpop.f32.mrf.mxu3 }
 0x1b2   : > { %4509 = vst [vmem:[#allocation29_spill] sm:$0xff] %v3751_v29 }
 0x1b3   : > { %4510 = vst [vmem:[#allocation30_spill] sm:$0xff] %v3753_v30  ;;  %v1862_v30 = vand.u32 4294901760, %v1861_v47 }
 0x1b5   : > { %v1382_v35 = vpop.f32.mrf.mxu0  ;;  %1863 = vmatpush.msra.mxu3 %v1862_v30 }
 0x1b7   : > { %v1422_v46 = vpop.f32.mrf.mxu1 }
 0x1b9   : > { %v3757_v36 = vpop.f32.mrf.mxu2  ;;  %v1344_v37 = vpop.f32.mrf.mxu3 }
 0x1ba   : > { %4512 = vst [vmem:[#allocation32_spill] sm:$0xff] %v3757_v36 }
 0x1bd   : > { %v1387_v26 = vpop.f32.mrf.mxu0 }
 0x1bf   : > { %v1428_v22 = vpop.f32.mrf.mxu1 }
 0x1c1   : > { %v1289_v43 = vpop.f32.mrf.mxu2  ;;  %v1348_v44 = vpop.f32.mrf.mxu3 }
 0x1c2   : > { %v1345_v48 = vadd.f32 %v1344_v37, %v1289_v43  ;;  %v1865_v37 = vsub.f32 %v3280_v24, %v1809_v32 }
 0x1c4   : > { %v1383_v40 = vadd.f32 %v1382_v35, %v1345_v48  ;;  %v1866_v35 = vand.u32 4294901760, %v1865_v37 }
 0x1c5   : > { %v1392_v30 = vpop.f32.mrf.mxu0 }
 0x1c6   : > { %v1423_v36 = vadd.f32 %v1422_v46, %v1383_v40  ;;  %v1867_v46 = vsub.f32 %v1865_v37, %v1866_v35 }
 0x1c7   : > { %v1434_v24 = vpop.f32.mrf.mxu1 }
 0x1c9   : > { %v1297_v49 = vpop.f32.mrf.mxu2  ;;  %v1352_v50 = vpop.f32.mrf.mxu3 }
 0x1ca   : > { %v1349_v41 = vadd.f32 %v1348_v44, %v1297_v49 }
 0x1cc   : > { %v1388_v33 = vadd.f32 %v1387_v26, %v1349_v41 }
 0x1ce   : > { %v1429_v44 = vadd.f32 %v1428_v22, %v1388_v33 }
 0x1d1   : > { %v1305_v31 = vpop.f32.mrf.mxu2  ;;  %v1356_v39 = vpop.f32.mrf.mxu3 }
 0x1d2   : > { %v1353_v49 = vadd.f32 %v1352_v50, %v1305_v31 }
 0x1d9   : > { %v1313_v27 = vpop.f32.mrf.mxu2  ;;  %v1502_v51 = vpop.f32.mrf.mxu3 }
 0x1da   : > { %v1357_v31 = vadd.f32 %v1356_v39, %v1313_v27 }
 0x1e1   : > { %v1467_v38 = vpop.f32.mrf.mxu2  ;;  %v1506_v43 = vpop.f32.mrf.mxu3 }
 0x1e2   : > { %v1468_v21 = vadd.f32 %v1467_v38, %v1423_v36  ;;  %v1393_v38 = vadd.f32 %v1392_v30, %v1353_v49  ;;  %v1440_v49 = vpop.f32.mrf.mxu1 }
 0x1e4   : > { %v1503_v29 = vadd.f32 %v1502_v51, %v1468_v21  ;;  %v1868_v21 = vand.u32 4294901760, %v1867_v46  ;;  %v1435_v26 = vadd.f32 %v1434_v24, %v1393_v38 }
 0x1e6   : > { %v1530_v47 = vsel %vm454_vm0, %v1503_v29, 0  ;;  %1869 = vmatpush.msra.mxu3 %v1868_v21 }
 0x1e7   : > { %v3779_v48 = vand.u32 4294901760, %v1530_v47 }
 0x1e9   : > { %v3782_v40 = vsub.f32 %v1530_v47, %v3779_v48  ;;  %v1471_v18 = vpop.f32.mrf.mxu2  ;;  %1619 = vmatmul.f32.vlgmr.msra.gmra.mxu1 %v3779_v48  ;;  %v1510_v51 = vpop.f32.mrf.mxu3 }
 0x1ea   : > { %v1472_v36 = vadd.f32 %v1471_v18, %v1429_v44  ;;  %1943 = vmatpush.msra.mxu1 %v1807_v34 }
 0x1eb   : > { %1657 = vmatmul.f32.vlgmr.msrb.gmra.mxu2 %v3782_v40  ;;  %v3787_v29 = vand.u32 4294901760, %v3782_v40 }
 0x1ec   : > { %v1507_v41 = vadd.f32 %v1506_v43, %v1472_v36  ;;  %1988 = vmatpush.msrb.mxu2 %v1860_v45  ;;  %1945 = vmatpush.msra.mxu1 %v1809_v32  ;;  %v1397_v43 = vpop.f32.mrf.mxu0 }
 0x1ed   : > { %1697 = vmatmul.f32.vlgmr.msrb.gmra.mxu3 %v3787_v29  ;;  %v1562_v22 = vsub.f32 %v3782_v40, %v3787_v29 }
 0x1ee   : > { %v1533_v18 = vsel %vm454_vm0, %v1507_v41, 0  ;;  %2025 = vmatpush.msrb.mxu3 %v1807_v34  ;;  %1992 = vmatpush.msrb.mxu2 %v1866_v35  ;;  %v1398_v35 = vadd.f32 %v1397_v43, %v1357_v31 }
 0x1ef   : > { %v3793_v33 = vand.u32 4294901760, %v1533_v18  ;;  %v1563_v50 = vand.u32 4294901760, %v1562_v22 }
 0x1f0   : > { %2027 = vmatpush.msrb.mxu3 %v1809_v32  ;;  %v1441_v36 = vadd.f32 %v1440_v49, %v1398_v35  ;;  %v2065_v49 = vld [vmem:[%s4464_s4 + $0x60] sm:$0xff] }
 0x1f1   : > { %v3796_v45 = vsub.f32 %v1533_v18, %v3793_v33  ;;  %v1475_v47 = vpop.f32.mrf.mxu2  ;;  %1564 = vmatmul.f32.vlgmr.msra.gmra.mxu0 %v1563_v50  ;;  %1623 = vmatmul.f32.gmra.mxu1 %v3793_v33 }
 0x1f2   : > { %v1476_v30 = vadd.f32 %v1475_v47, %v1435_v26  ;;  %1903 = vmatpush.msra.mxu0 %v1859_v42  ;;  %v1514_v42 = vpop.f32.mrf.mxu3 }
 0x1f3   : > { %1662 = vmatmul.f32.gmra.mxu2 %v3796_v45  ;;  %v1569_v34 = vand.u32 4294901760, %v3796_v45 }
 0x1f4   : > { %v1511_v44 = vadd.f32 %v1510_v51, %v1476_v30  ;;  %1906 = vmatpush.msra.mxu0 %v1865_v37 }
 0x1f5   : > { %1703 = vmatmul.f32.gmra.mxu3 %v1569_v34  ;;  %v1570_v39 = vsub.f32 %v3796_v45, %v1569_v34 }
 0x1f6   : > { %v1536_v27 = vsel %vm454_vm0, %v1511_v44, 0 }
 0x1f7   : > { %v1575_v32 = vand.u32 4294901760, %v1536_v27  ;;  %v1571_v46 = vand.u32 4294901760, %v1570_v39 }
 0x1f9   : > { %v1576_v21 = vsub.f32 %v1536_v27, %v1575_v32  ;;  %v1479_v24 = vpop.f32.mrf.mxu2  ;;  %1572 = vmatmul.f32.gmra.mxu0 %v1571_v46  ;;  %1627 = vmatmul.f32.gmra.mxu1 %v1575_v32 }
 0x1fa   : > { %v1480_v38 = vadd.f32 %v1479_v24, %v1441_v36  ;;  %v2064_v36 = vld [vmem:[%s4464_s4 + $0x58] sm:$0xff] }
 0x1fb   : > { %1667 = vmatmul.f32.gmra.mxu2 %v1576_v21  ;;  %v1577_v41 = vand.u32 4294901760, %v1576_v21 }
 0x1fc   : > { %v1515_v22 = vadd.f32 %v1514_v42, %v1480_v38 }
 0x1fd   : > { %1709 = vmatmul.f32.gmra.mxu3 %v1577_v41  ;;  %v1578_v37 = vsub.f32 %v1576_v21, %v1577_v41 }
 0x1fe   : > { %v1539_v18 = vsel %vm454_vm0, %v1515_v22, 0  ;;  %v2063_v22 = vld [vmem:[%s4464_s4 + $0x50] sm:$0xff] }
 0x1ff   : > { %v1583_v51 = vand.u32 4294901760, %v1539_v18  ;;  %v1579_v26 = vand.u32 4294901760, %v1578_v37 }
 0x201   : > { %v1584_v31 = vsub.f32 %v1539_v18, %v1583_v51  ;;  %1580 = vmatmul.f32.gmra.mxu0 %v1579_v26  ;;  %1631 = vmatmul.f32.gmra.mxu1 %v1583_v51 }
 0x203   : > { %1672 = vmatmul.f32.gmra.mxu2 %v1584_v31  ;;  %v1585_v43 = vand.u32 4294901760, %v1584_v31 }
 0x205   : > { %1715 = vmatmul.f32.gmra.mxu3 %v1585_v43  ;;  %v1586_v47 = vsub.f32 %v1584_v31, %v1585_v43 }
 0x207   : > { %v1587_v30 = vand.u32 4294901760, %v1586_v47 }
 0x209   : > { %1588 = vmatmul.f32.gmra.mxu0 %v1587_v30  ;;  %1777 = vmatmul.f32.vlgmr.msrb.gmra.mxu1 %v3779_v48 }
 0x20b   : > { %1816 = vmatmul.f32.vlgmr.msra.gmra.mxu2 %v1563_v50 }
 0x20d   : > { %1871 = vmatmul.f32.vlgmr.msra.gmra.mxu3 %v3779_v48 }
 0x211   : > { %1742 = vmatmul.f32.vlgmr.msrb.gmra.mxu0 %v3779_v48  ;;  %1781 = vmatmul.f32.gmra.mxu1 %v3793_v33 }
 0x213   : > { %1824 = vmatmul.f32.gmra.mxu2 %v1571_v46  ;;  %v3855_v46 = vand.u32 4294901760, %v2065_v49 }
 0x215   : > { %1875 = vmatmul.f32.gmra.mxu3 %v3793_v33  ;;  %v3867_v38 = vsub.f32 %v2065_v49, %v3855_v46  ;;  %v2061_v49 = vld [vmem:[%s4464_s4 + $0x40] sm:$0xff] }
 0x219   : > { %1746 = vmatmul.f32.gmra.mxu0 %v3793_v33  ;;  %1785 = vmatmul.f32.gmra.mxu1 %v1575_v32 }
 0x21b   : > { %1832 = vmatmul.f32.gmra.mxu2 %v1579_v26  ;;  %v3882_v26 = vand.u32 4294901760, %v2063_v22 }
 0x21d   : > { %1879 = vmatmul.f32.gmra.mxu3 %v1575_v32 }
 0x221   : > { %1750 = vmatmul.f32.gmra.mxu0 %v1575_v32  ;;  %1789 = vmatmul.f32.gmra.mxu1 %v1583_v51 }
 0x223   : > { %1840 = vmatmul.f32.gmra.mxu2 %v1587_v30 }
 0x225   : > { %1883 = vmatmul.f32.gmra.mxu3 %v1583_v51 }
 0x229   : > { %1754 = vmatmul.f32.gmra.mxu0 %v1583_v51  ;;  %1949 = vmatmul.f32.vlgmr.msra.gmra.mxu1 %v3787_v29  ;;  %v2067_v29 = vld [vmem:[%s4464_s4 + $0x70] sm:$0xff] }
 0x22a   : > { %v3828_v50 = vand.u32 4294901760, %v2067_v29 }
 0x22b   : > { %1994 = vmatmul.f32.vlgmr.msrb.gmra.mxu2 %v3779_v48 }
 0x22c   : > { %v3837_v35 = vsub.f32 %v2067_v29, %v3828_v50 }
 0x22d   : > { %2029 = vmatmul.f32.vlgmr.msrb.gmra.mxu3 %v3779_v48  ;;  %v2068_v48 = vld [vmem:[%s4464_s4 + $0x78] sm:$0xff] }
 0x22e   : > { %v4472_v27 = vand.u32 4294901760, %v3837_v35  ;;  %v4520_v0 = vand.u32 4294901760, %v3837_v35 }
 0x230   : > { %v2165_v24 = vsub.f32 %v3837_v35, %v4472_v27 }
 0x231   : > { %1909 = vmatmul.f32.vlgmr.msra.gmra.mxu0 %v3782_v40  ;;  %1955 = vmatmul.f32.gmra.mxu1 %v1569_v34  ;;  %v3820_v40 = vand.u32 4294901760, %v2068_v48 }
 0x232   : > { %v2166_v37 = vand.u32 4294901760, %v2165_v24  ;;  %v3910_v24 = vand.u32 4294901760, %v2061_v49 }
 0x233   : > { %1998 = vmatmul.f32.gmra.mxu2 %v3793_v33  ;;  %2339 = vmatpush.msra.mxu3 %v3820_v40 }
 0x234   : > { %2092 = vmatpush.msrb.mxu0 %v3820_v40 }
 0x235   : > { %2033 = vmatmul.f32.gmra.mxu3 %v3793_v33  ;;  %v3826_v33 = vsub.f32 %v2068_v48, %v3820_v40  ;;  %v3896_v48 = vsub.f32 %v2063_v22, %v3882_v26 }
 0x236   : > { %2341 = vmatpush.msra.mxu3 %v3828_v50  ;;  %2094 = vmatpush.msrb.mxu0 %v3828_v50 }
 0x237   : > { %v4474_v34 = vand.u32 4294901760, %v3826_v33  ;;  %2271 = vmatpush.msra.mxu2 %v3826_v33 }
 0x239   : > { %1914 = vmatmul.f32.gmra.mxu0 %v3796_v45  ;;  %1961 = vmatmul.f32.gmra.mxu1 %v1577_v41  ;;  %v2066_v45 = vld [vmem:[%s4464_s4 + $0x68] sm:$0xff]  ;;  %v2159_v39 = vsub.f32 %v3826_v33, %v4474_v34  ;;  %v3871_v41 = vand.u32 4294901760, %v2064_v36 }
 0x23a   : > { %v3840_v44 = vand.u32 4294901760, %v2066_v45  ;;  %2274 = vmatpush.msra.mxu2 %v3837_v35  ;;  %v4088_v35 = vld [vmem:[%s4462_s2 + $0x2] sm:$0x3] }
 0x23b   : > { %2002 = vmatmul.f32.gmra.mxu2 %v1575_v32 }
 0x23c   : > { %2343 = vmatpush.msra.mxu3 %v3840_v44  ;;  %2096 = vmatpush.msrb.mxu0 %v3840_v44 }
 0x23d   : > { %2037 = vmatmul.f32.gmra.mxu3 %v1575_v32  ;;  %v3852_v32 = vsub.f32 %v2066_v45, %v3840_v44 }
 0x23e   : > { %2345 = vmatpush.msra.mxu3 %v3855_v46  ;;  %2098 = vmatpush.msrb.mxu0 %v3855_v46 }
 0x23f   : > { %v4471_v42 = vand.u32 4294901760, %v3852_v32  ;;  %2277 = vmatpush.msra.mxu2 %v3852_v32 }
 0x240   : > { %2347 = vmatpush.msra.mxu3 %v3871_v41  ;;  %2100 = vmatpush.msrb.mxu0 %v3871_v41 }
 0x241   : > { %1919 = vmatmul.f32.gmra.mxu0 %v1576_v21  ;;  %1967 = vmatmul.f32.gmra.mxu1 %v1585_v43  ;;  %v2160_v21 = vand.u32 4294901760, %v2159_v39  ;;  %v2171_v18 = vsub.f32 %v3852_v32, %v4471_v42  ;;  %v2062_v43 = vld [vmem:[%s4464_s4 + $0x48] sm:$0xff] }
 0x242   : > { %2280 = vmatpush.msra.mxu2 %v3867_v38  ;;  %v3898_v29 = vand.u32 4294901760, %v2062_v43  ;;  %2349 = vmatpush.msra.mxu3 %v3882_v26 }
 0x243   : > { %2006 = vmatmul.f32.gmra.mxu2 %v1583_v51  ;;  %2161 = vmatpush.msrb.mxu1 %v2160_v21  ;;  %v2172_v47 = vand.u32 4294901760, %v2171_v18 }
 0x244   : > { %v3908_v21 = vsub.f32 %v2062_v43, %v3898_v29  ;;  %2102 = vmatpush.msrb.mxu0 %v3882_v26  ;;  %2351 = vmatpush.msra.mxu3 %v3898_v29 }
 0x245   : > { %2041 = vmatmul.f32.gmra.mxu3 %v1583_v51  ;;  %v4469_v51 = vand.u32 4294901760, %v3867_v38  ;;  %2167 = vmatpush.msrb.mxu1 %v2166_v37  ;;  %v2060_v37 = vld [vmem:[%s4464_s4 + $0x38] sm:$0xff] }
 0x246   : > { %v4473_v43 = vand.u32 4294901760, %v3908_v21  ;;  %2104 = vmatpush.msrb.mxu0 %v3898_v29  ;;  %2353 = vmatpush.msra.mxu3 %v3910_v24 }
 0x247   : > { %v2177_v30 = vsub.f32 %v3867_v38, %v4469_v51  ;;  %2173 = vmatpush.msrb.mxu1 %v2172_v47  ;;  %v3926_v47 = vsub.f32 %v2061_v49, %v3910_v24 }
 0x248   : > { %2106 = vmatpush.msrb.mxu0 %v3910_v24 }
 0x249   : > { %1924 = vmatmul.f32.gmra.mxu0 %v1584_v31  ;;  %v3885_v31 = vsub.f32 %v2064_v36, %v3871_v41  ;;  %v2178_v39 = vand.u32 4294901760, %v2177_v30  ;;  %v4470_v36 = vand.u32 4294901760, %v3896_v48  ;;  %v3928_v30 = vand.u32 4294901760, %v2060_v37 }
 0x24a   : > { %v4475_v49 = vand.u32 4294901760, %v3926_v47 }
 0x24b   : > { %v4468_v45 = vand.u32 4294901760, %v3885_v31  ;;  %2283 = vmatpush.msra.mxu2 %v3885_v31  ;;  %2179 = vmatpush.msrb.mxu1 %v2178_v39  ;;  %v2189_v18 = vsub.f32 %v3896_v48, %v4470_v36  ;;  %v2059_v39 = vld [vmem:[%s4464_s4 + $0x30] sm:$0xff]  ;;  %v2195_v36 = vsub.f32 %v3908_v21, %v4473_v43  ;;  %v3941_v42 = vsub.f32 %v2060_v37, %v3928_v30 }
 0x24c   : > { %v2201_v43 = vsub.f32 %v3926_v47, %v4475_v49  ;;  %2355 = vmatpush.msra.mxu3 %v3928_v30  ;;  %2108 = vmatpush.msrb.mxu0 %v3928_v30 }
 0x24d   : > { %v2183_v22 = vsub.f32 %v3885_v31, %v4468_v45  ;;  %2286 = vmatpush.msra.mxu2 %v3896_v48  ;;  %v2190_v51 = vand.u32 4294901760, %v2189_v18  ;;  %v2058_v18 = vld [vmem:[%s4464_s4 + $0x28] sm:$0xff]  ;;  %v2196_v27 = vand.u32 4294901760, %v2195_v36  ;;  %v4476_v34 = vand.u32 4294901760, %v3941_v42  ;;  %v2057_v36 = vld [vmem:[%s4464_s4 + $0x20] sm:$0xff] }
 0x24e   : > { %v3954_v37 = vand.u32 4294901760, %v2058_v18  ;;  %v2202_v20 = vand.u32 4294901760, %v2201_v43  ;;  %v3971_v15 = vand.u32 4294901760, %v2057_v36  ;;  %v2056_v43 = vld [vmem:[%s4464_s4 + $0x18] sm:$0xff] }
 0x24f   : > { %v2184_v45 = vand.u32 4294901760, %v2183_v22  ;;  %2289 = vmatpush.msra.mxu2 %v3908_v21  ;;  %v3945_v22 = vand.u32 4294901760, %v2059_v39  ;;  %v2207_v49 = vsub.f32 %v3941_v42, %v4476_v34  ;;  %v3986_v25 = vand.u32 4294901760, %v2056_v43 }
 0x250   : > { %v3969_v28 = vsub.f32 %v2058_v18, %v3954_v37  ;;  %v3984_v23 = vsub.f32 %v2057_v36, %v3971_v15 }
 0x251   : > { %2185 = vmatpush.msrb.mxu1 %v2184_v45  ;;  %2292 = vmatpush.msra.mxu2 %v3926_v47  ;;  %v3959_v45 = vsub.f32 %v2059_v39, %v3945_v22  ;;  %v2208_v34 = vand.u32 4294901760, %v2207_v49  ;;  %v2055_v49 = vld [vmem:[%s4464_s4 + $0x10] sm:$0xff]  ;;  %v4002_v17 = vsub.f32 %v2056_v43, %v3986_v25 }
 0x252   : > { %2357 = vmatpush.msra.mxu3 %v3945_v22  ;;  %2110 = vmatpush.msrb.mxu0 %v3945_v22  ;;  %v4478_v18 = vand.u32 4294901760, %v3969_v28  ;;  %v4479_v14 = vand.u32 4294901760, %v3984_v23 }
 0x253   : > { %2191 = vmatpush.msrb.mxu1 %v2190_v51  ;;  %2295 = vmatpush.msra.mxu2 %v3941_v42  ;;  %v4477_v39 = vand.u32 4294901760, %v3959_v45  ;;  %v4480_v13 = vand.u32 4294901760, %v4002_v17 }
 0x254   : > { %2359 = vmatpush.msra.mxu3 %v3954_v37  ;;  %2112 = vmatpush.msrb.mxu0 %v3954_v37  ;;  %v2219_v36 = vsub.f32 %v3969_v28, %v4478_v18  ;;  %v2225_v43 = vsub.f32 %v3984_v23, %v4479_v14 }
 0x255   : > { %2197 = vmatpush.msrb.mxu1 %v2196_v27  ;;  %2298 = vmatpush.msra.mxu2 %v3959_v45  ;;  %v2213_v27 = vsub.f32 %v3959_v45, %v4477_v39  ;;  %v2231_v14 = vsub.f32 %v4002_v17, %v4480_v13 }
 0x256   : > { %2361 = vmatpush.msra.mxu3 %v3971_v15  ;;  %2114 = vmatpush.msrb.mxu0 %v3971_v15  ;;  %v2220_v18 = vand.u32 4294901760, %v2219_v36  ;;  %v2226_v36 = vand.u32 4294901760, %v2225_v43 }
 0x257   : > { %2203 = vmatpush.msrb.mxu1 %v2202_v20  ;;  %2301 = vmatpush.msra.mxu2 %v3969_v28  ;;  %v4004_v20 = vand.u32 4294901760, %v2055_v49  ;;  %v2214_v39 = vand.u32 4294901760, %v2213_v27  ;;  %v2053_v27 = vld [vmem:[%s4464_s4] sm:$0xff]  ;;  %v2232_v13 = vand.u32 4294901760, %v2231_v14 }
 0x258   : > { %2363 = vmatpush.msra.mxu3 %v3986_v25  ;;  %2116 = vmatpush.msrb.mxu0 %v3986_v25  ;;  %v4031_v8 = vand.u32 4294901760, %v2053_v27 }
 0x259   : > { %2209 = vmatpush.msrb.mxu1 %v2208_v34  ;;  %2304 = vmatpush.msra.mxu2 %v3984_v23  ;;  %v4017_v19 = vsub.f32 %v2055_v49, %v4004_v20  ;;  %v4022_v34 = vand.u32 4294901760, %v2054_v11 }
 0x25a   : > { %4518 = vst [vmem:[#allocation38_spill] sm:$0xff] %v4031_v8  ;;  %2365 = vmatpush.msra.mxu3 %v4004_v20  ;;  %2118 = vmatpush.msrb.mxu0 %v4004_v20  ;;  %v4047_v10 = vsub.f32 %v2053_v27, %v4031_v8 }
 0x25b   : > { %2215 = vmatpush.msrb.mxu1 %v2214_v39  ;;  %2307 = vmatpush.msra.mxu2 %v4002_v17  ;;  %v4481_v49 = vand.u32 4294901760, %v4017_v19  ;;  %v4038_v4 = vsub.f32 %v2054_v11, %v4022_v34 }
 0x25c   : > { %2367 = vmatpush.msra.mxu3 %v4022_v34  ;;  %2120 = vmatpush.msrb.mxu0 %v4022_v34  ;;  %v2248_v14 = vand.u32 4294901760, %v4047_v10 }
 0x25d   : > { %2221 = vmatpush.msrb.mxu1 %v2220_v18  ;;  %2310 = vmatpush.msra.mxu2 %v4017_v19  ;;  %v2237_v7 = vsub.f32 %v4017_v19, %v4481_v49  ;;  %v4482_v11 = vand.u32 4294901760, %v4038_v4  ;;  %v4519_v49 = vand.u32 4294901760, %v3826_v33  ;;  %v4078_v33 = vld [vmem:[%s4462_s2] sm:$0x3] }
 0x25e   : > { %2369 = vmatpush.msra.mxu3 %v4031_v8  ;;  %2122 = vmatpush.msrb.mxu0 %v4031_v8  ;;  %v4521_v8 = vand.u32 4294901760, %v3852_v32  ;;  %v4523_v32 = vand.u32 4294901760, %v3885_v31 }
 0x25f   : > { %2227 = vmatpush.msrb.mxu1 %v2226_v36  ;;  %2313 = vmatpush.msra.mxu2 %v4038_v4  ;;  %v2238_v3 = vand.u32 4294901760, %v2237_v7  ;;  %v2243_v27 = vsub.f32 %v4038_v4, %v4482_v11  ;;  %v2249_v36 = vsub.f32 %v4047_v10, %v2248_v14 }
 0x260   : > { %2398 = vmatpush.msra.mxu0 %v4519_v49 }
 0x261   : > { %2233 = vmatpush.msrb.mxu1 %v2232_v13  ;;  %2316 = vmatpush.msra.mxu2 %v4047_v10  ;;  %v2244_v7 = vand.u32 4294901760, %v2243_v27  ;;  %v2250_v12 = vand.u32 4294901760, %v2249_v36 }
 0x262   : > { %2402 = vmatpush.msra.mxu0 %v4520_v0  ;;  %v4522_v0 = vand.u32 4294901760, %v3867_v38 }
 0x263   : > { %2239 = vmatpush.msrb.mxu1 %v2238_v3 }
 0x264   : > { %2406 = vmatpush.msra.mxu0 %v4521_v8  ;;  %v4091_v8 = vperm.slane %v4078_v33, 0 }
 0x265   : > { %2245 = vmatpush.msrb.mxu1 %v2244_v7 }
 0x266   : > { %v3975_v51 = vpop.f32.mrf.mxu1  ;;  %2410 = vmatpush.msra.mxu0 %v4522_v0  ;;  %v766_v27 = vadd.f32 %v3676_v55, %v4091_v8  ;;  %v774_v55 = vadd.f32 %v3682_v58, %v4091_v8  ;;  %v790_v10 = vadd.f32 %v3696_v1, %v4091_v8 }
 0x267   : > { %2251 = vmatpush.msrb.mxu1 %v2250_v12  ;;  %v4097_v12 = vperm.slane %v4088_v35, 0 }
 0x268   : > { %2414 = vmatpush.msra.mxu0 %v4523_v32  ;;  %v821_v7 = vadd.f32 %v3670_v52, %v766_v27  ;;  %v4528_v52 = vand.u32 4294901760, %v3959_v45  ;;  %v825_v0 = vadd.f32 %v3678_v56, %v774_v55  ;;  %v4529_v45 = vand.u32 4294901760, %v3969_v28  ;;  %v2072_v28 = vld [vmem:[%s4464_s4 + $0x98] sm:$0xff] }
 0x269   : > { %2477 = vmatpush.msra.mxu1 %v3820_v40  ;;  %v4524_v40 = vand.u32 4294901760, %v3896_v48  ;;  %v4526_v48 = vand.u32 4294901760, %v3926_v47 }
 0x26a   : > { %v859_v32 = vadd.f32 %v3672_v53, %v821_v7  ;;  %v4530_v53 = vand.u32 4294901760, %v3984_v23 }
 0x26b   : > { %2479 = vmatpush.msra.mxu1 %v3828_v50  ;;  %2418 = vmatpush.msra.mxu0 %v4524_v40  ;;  %v4525_v50 = vand.u32 4294901760, %v3908_v21  ;;  %v4527_v21 = vand.u32 4294901760, %v3941_v42 }
 0x26c   : > { %v899_v27 = vadd.f32 %v3674_v54, %v859_v32 }
 0x26d   : > { %2481 = vmatpush.msra.mxu1 %v3840_v44  ;;  %2422 = vmatpush.msra.mxu0 %v4525_v50  ;;  %v864_v50 = vadd.f32 %v3680_v57, %v825_v0 }
 0x26e   : > { %v1565_v39 = vpop.f32.mrf.mxu0  ;;  %v4035_v16 = vpop.f32.mrf.mxu1  ;;  %v944_v23 = vadd.f32 %v3704_v5, %v899_v27 }
 0x26f   : > { %v4041_v43 = vpop.f32.mrf.mxu2  ;;  %2483 = vmatpush.msra.mxu1 %v3855_v46  ;;  %v1566_v44 = vadd.f32 %v1565_v39, %v4097_v12  ;;  %2426 = vmatpush.msra.mxu0 %v4526_v48  ;;  %v2073_v46 = vld [vmem:[%s4464_s4 + $0xa0] sm:$0x3] }
 0x270   : > { %v4051_v18 = vpop.f32.mrf.mxu3  ;;  %v2089_v39 = vsel %vm2087_vm1, %v2073_v46, 0 }
 0x271   : > { %2485 = vmatpush.msra.mxu1 %v3871_v41  ;;  %2430 = vmatpush.msra.mxu0 %v4527_v21  ;;  %v1621_v41 = vadd.f32 %v3975_v51, %v1566_v44  ;;  %v4128_v47 = vand.u32 4294901760, %v2089_v39 }
 0x273   : > { %2487 = vmatpush.msra.mxu1 %v3882_v26  ;;  %2434 = vmatpush.msra.mxu0 %v4528_v52  ;;  %v4140_v42 = vsub.f32 %v2089_v39, %v4128_v47  ;;  %v1659_v51 = vadd.f32 %v4041_v43, %v1621_v41  ;;  %v4159_v43 = vand.u32 4294901760, %v2072_v28  ;;  %v4533_v52 = vand.u32 4294901760, %v4038_v4 }
 0x274   : > { %2537 = vmatpush.msrb.mxu2 %v4128_v47 }
 0x275   : > { %2489 = vmatpush.msra.mxu1 %v3898_v29  ;;  %2438 = vmatpush.msra.mxu0 %v4529_v45  ;;  %v4177_v5 = vsub.f32 %v2072_v28, %v4159_v43 }
 0x276   : > { %v1573_v13 = vpop.f32.mrf.mxu0  ;;  %v4069_v63 = vpop.f32.mrf.mxu1  ;;  %2539 = vmatpush.msrb.mxu2 %v4159_v43 }
 0x277   : > { %v4071_v11 = vpop.f32.mrf.mxu2  ;;  %2491 = vmatpush.msra.mxu1 %v3910_v24  ;;  %v1574_v56 = vadd.f32 %v1573_v13, %v4097_v12  ;;  %2442 = vmatpush.msra.mxu0 %v4530_v53  ;;  %v2592_v24 = vand.u32 4294901760, %v4140_v42  ;;  %v4531_v13 = vand.u32 4294901760, %v4002_v17  ;;  %v782_v17 = vadd.f32 %v3690_v62, %v4091_v8  ;;  %v2070_v62 = vld [vmem:[%s4464_s4 + $0x88] sm:$0xff] }
 0x278   : > { %v4080_v3 = vpop.f32.mrf.mxu3  ;;  %v2598_v41 = vand.u32 4294901760, %v4177_v5 }
 0x279   : > { %2493 = vmatpush.msra.mxu1 %v3928_v30  ;;  %2446 = vmatpush.msra.mxu0 %v4531_v13  ;;  %v1699_v30 = vadd.f32 %v4051_v18, %v1659_v51  ;;  %v1625_v54 = vadd.f32 %v4035_v16, %v1574_v56  ;;  %v2593_v57 = vsub.f32 %v4140_v42, %v2592_v24  ;;  %v4532_v18 = vand.u32 4294901760, %v4017_v19 }
 0x27a   : > { %v4198_v19 = vand.u32 4294901760, %v2070_v62  ;;  %v829_v45 = vadd.f32 %v3684_v59, %v782_v17  ;;  %v2599_v51 = vsub.f32 %v4177_v5, %v2598_v41 }
 0x27b   : > { %2495 = vmatpush.msra.mxu1 %v3945_v22  ;;  %v2071_v22 = vld [vmem:[%s4464_s4 + $0x90] sm:$0xff]  ;;  %2450 = vmatpush.msra.mxu0 %v4532_v18  ;;  %v2594_v46 = vand.u32 4294901760, %v2593_v57  ;;  %v1664_v0 = vadd.f32 %v4071_v11, %v1625_v54  ;;  %v4534_v57 = vld [vmem:[#allocation38_spill] sm:$0xff] }
 0x27c   : > { %v4179_v16 = vand.u32 4294901760, %v2071_v22  ;;  %v2600_v56 = vand.u32 4294901760, %v2599_v51 }
 0x27d   : > { %2497 = vmatpush.msra.mxu1 %v3954_v37  ;;  %v905_v37 = vadd.f32 %v3686_v60, %v864_v50  ;;  %2454 = vmatpush.msra.mxu0 %v4533_v52  ;;  %v1705_v50 = vadd.f32 %v4080_v3, %v1664_v0 }
 0x27e   : > { %v1581_v38 = vpop.f32.mrf.mxu0  ;;  %v4102_v49 = vpop.f32.mrf.mxu1  ;;  %2541 = vmatpush.msrb.mxu2 %v4179_v16  ;;  %v4196_v60 = vsub.f32 %v2071_v22, %v4179_v16  ;;  %2595 = vmatpush.msrb.mxu3 %v2594_v46 }
 0x27f   : > { %v4106_v36 = vpop.f32.mrf.mxu2  ;;  %2499 = vmatpush.msra.mxu1 %v3971_v15  ;;  %v1582_v21 = vadd.f32 %v1581_v38, %v4097_v12  ;;  %v979_v15 = vadd.f32 %v3698_v2, %v944_v23  ;;  %v2069_v38 = vld [vmem:[%s4464_s4 + $0x80] sm:$0xff]  ;;  %v4215_v2 = vsub.f32 %v2070_v62, %v4198_v19  ;;  %2458 = vmatpush.msra.mxu0 %v2248_v14 }
 0x280   : > { %v4111_v31 = vpop.f32.mrf.mxu3  ;;  %v2604_v4 = vand.u32 4294901760, %v4196_v60  ;;  %2543 = vmatpush.msrb.mxu2 %v4198_v19  ;;  %v4221_v59 = vand.u32 4294901760, %v2069_v38  ;;  %2601 = vmatpush.msrb.mxu3 %v2600_v56 }
 0x281   : > { %2501 = vmatpush.msra.mxu1 %v3986_v25  ;;  %v948_v25 = vadd.f32 %v3712_v9, %v905_v37  ;;  %v2610_v27 = vand.u32 4294901760, %v4215_v2 }
 0x282   : > { %v2605_v53 = vsub.f32 %v4196_v60, %v2604_v4  ;;  %v4231_v9 = vsub.f32 %v2069_v38, %v4221_v59  ;;  %2545 = vmatpush.msrb.mxu2 %v4221_v59  ;;  %v4538_v38 = vld [vmem:[#allocation8_spill] sm:$0xff] }
 0x283   : > { %2503 = vmatpush.msra.mxu1 %v4004_v20  ;;  %v2611_v3 = vsub.f32 %v4215_v2, %v2610_v27  ;;  %v983_v1 = vadd.f32 %v3706_v6, %v948_v25  ;;  %v4535_v6 = vld [vmem:[#allocation6_spill] sm:$0xff] }
 0x284   : > { %v2606_v13 = vand.u32 4294901760, %v2605_v53  ;;  %v2616_v54 = vand.u32 4294901760, %v4231_v9  ;;  %v4540_v53 = vld [vmem:[#allocation10_spill] sm:$0xff] }
 0x285   : > { %2505 = vmatpush.msra.mxu1 %v4022_v34  ;;  %v2612_v22 = vand.u32 4294901760, %v2611_v3 }
 0x286   : > { %v4132_v58 = vpop.f32.mrf.mxu0  ;;  %v1778_v26 = vpop.f32.mrf.mxu1  ;;  %2607 = vmatpush.msrb.mxu3 %v2606_v13  ;;  %v2617_v37 = vsub.f32 %v4231_v9, %v2616_v54  ;;  %v4297_v13 = vperm.slane %v4088_v35, 1 }
 0x287   : > { %v4136_v40 = vpop.f32.mrf.mxu2  ;;  %2507 = vmatpush.msra.mxu1 %v4534_v57  ;;  %v1590_v17 = vadd.f32 %v4132_v58, %v4097_v12 }
 0x288   : > { %v4143_v29 = vpop.f32.mrf.mxu3  ;;  %2613 = vmatpush.msrb.mxu3 %v2612_v22  ;;  %v2618_v58 = vand.u32 4294901760, %v2617_v37 }
 0x28a   : > { %2619 = vmatpush.msrb.mxu3 %v2618_v58 }
 0x28e   : > { %v1743_v44 = vpop.f32.mrf.mxu0  ;;  %v1782_v48 = vpop.f32.mrf.mxu1 }
 0x28f   : > { %v1744_v7 = vadd.f32 %v1743_v44, %v1699_v30  ;;  %v4184_v55 = vpop.f32.mrf.mxu2 }
 0x290   : > { %v4191_v39 = vpop.f32.mrf.mxu3 }
 0x291   : > { %v1779_v32 = vadd.f32 %v1778_v26, %v1744_v7  ;;  %v1629_v26 = vadd.f32 %v4069_v63, %v1582_v21  ;;  %v869_v63 = vadd.f32 %v3688_v61, %v829_v45  ;;  %v4536_v7 = vld [vmem:[#allocation7_spill] sm:$0xff] }
 0x293   : > { %v2045_v11 = vmul.f32 %v1779_v32, %v979_v15  ;;  %v1669_v61 = vadd.f32 %v4106_v36, %v1629_v26  ;;  %v833_v36 = vadd.f32 %v4535_v6, %v790_v10  ;;  %v911_v46 = vadd.f32 %v4536_v7, %v869_v63  ;;  %v4541_v10 = vld [vmem:[#allocation9_spill] sm:$0xff] }
 0x294   : > { %v1633_v15 = vadd.f32 %v4102_v49, %v1590_v17 }
 0x295   : > { %v4227_v28 = vand.u32 4294901760, %v2045_v11  ;;  %v1711_v52 = vadd.f32 %v4111_v31, %v1669_v61  ;;  %v874_v45 = vadd.f32 %v4538_v38, %v833_v36  ;;  %v4547_v36 = vld [vmem:[#allocation19_spill] sm:$0xff]  ;;  %v4550_v38 = vld [vmem:[#allocation25_spill] sm:$0xff] }
 0x296   : > { %v1747_v20 = vpop.f32.mrf.mxu0  ;;  %v1786_v14 = vpop.f32.mrf.mxu1 }
 0x297   : > { %v2124_v34 = vsub.f32 %v2045_v11, %v4227_v28  ;;  %v1748_v23 = vadd.f32 %v1747_v20, %v1705_v50  ;;  %v4241_v30 = vpop.f32.mrf.mxu2  ;;  %2253 = vmatmul.f32.vlgmr.msrb.gmra.mxu1 %v4227_v28  ;;  %v917_v63 = vadd.f32 %v4541_v10, %v874_v45 }
 0x298   : > { %v4247_v8 = vpop.f32.mrf.mxu3  ;;  %2696 = vmatpush.msrb.mxu1 %v4128_v47 }
 0x299   : > { %v1783_v44 = vadd.f32 %v1782_v48, %v1748_v23  ;;  %2319 = vmatmul.f32.vlgmr.msra.gmra.mxu2 %v2124_v34  ;;  %v2125_v18 = vand.u32 4294901760, %v2124_v34  ;;  %v4537_v48 = vld [vmem:[#allocation14_spill] sm:$0xff] }
 0x29a   : > { %2744 = vmatpush.msra.mxu2 %v2592_v24  ;;  %2698 = vmatpush.msrb.mxu1 %v4159_v43  ;;  %v952_v21 = vadd.f32 %v4537_v48, %v911_v46  ;;  %v4270_v24 = vperm.slane %v4078_v33, 1  ;;  %v4539_v33 = vld [vmem:[#allocation12_spill] sm:$0xff] }
 0x29b   : > { %v2047_v62 = vmul.f32 %v1783_v44, %v983_v1  ;;  %2373 = vmatmul.f32.vlgmr.msra.gmra.mxu3 %v2125_v18  ;;  %v2126_v12 = vsub.f32 %v2124_v34, %v2125_v18  ;;  %v4546_v44 = vld [vmem:[#allocation13_spill] sm:$0xff] }
 0x29c   : > { %2748 = vmatpush.msra.mxu2 %v2598_v41  ;;  %2700 = vmatpush.msrb.mxu1 %v4179_v16  ;;  %v987_v26 = vadd.f32 %v4539_v33, %v952_v21  ;;  %v1018_v50 = vadd.f32 %v4540_v53, %v4270_v24  ;;  %v1026_v18 = vadd.f32 %v4546_v44, %v4270_v24  ;;  %v4553_v53 = vld [vmem:[#allocation22_spill] sm:$0xff] }
 0x29d   : > { %v2127_v0 = vand.u32 4294901760, %v2126_v12  ;;  %v4266_v32 = vand.u32 4294901760, %v2047_v62  ;;  %2790 = vmatpush.msra.mxu3 %v4128_v47  ;;  %v1674_v47 = vadd.f32 %v4136_v40, %v1633_v15  ;;  %v4542_v40 = vld [vmem:[#allocation18_spill] sm:$0xff]  ;;  %v4548_v12 = vld [vmem:[#allocation16_spill] sm:$0xff] }
 0x29e   : > { %v1751_v51 = vpop.f32.mrf.mxu0  ;;  %2752 = vmatpush.msra.mxu2 %v2604_v4  ;;  %v1790_v31 = vpop.f32.mrf.mxu1  ;;  %2702 = vmatpush.msrb.mxu1 %v4198_v19  ;;  %v956_v20 = vadd.f32 %v4542_v40, %v917_v63 }
 0x29f   : > { %v1752_v41 = vadd.f32 %v1751_v51, %v1711_v52  ;;  %v4274_v25 = vpop.f32.mrf.mxu2  ;;  %2128 = vmatmul.f32.vlgmr.msrb.gmra.mxu0 %v2127_v0  ;;  %2257 = vmatmul.f32.gmra.mxu1 %v4266_v32  ;;  %v2132_v49 = vsub.f32 %v2047_v62, %v4266_v32  ;;  %v4549_v52 = vld [vmem:[#allocation27_spill] sm:$0xff] }
 0x2a0   : > { %v4278_v11 = vpop.f32.mrf.mxu3  ;;  %2650 = vmatpush.msrb.mxu0 %v4140_v42  ;;  %2792 = vmatpush.msra.mxu3 %v4159_v43 }
 0x2a1   : > { %v1787_v4 = vadd.f32 %v1786_v14, %v1752_v41  ;;  %2324 = vmatmul.f32.gmra.mxu2 %v2132_v49  ;;  %v2133_v56 = vand.u32 4294901760, %v2132_v49  ;;  %2704 = vmatpush.msrb.mxu1 %v4221_v59  ;;  %v1717_v14 = vadd.f32 %v4143_v29, %v1674_v47  ;;  %v4544_v29 = vld [vmem:[#allocation21_spill] sm:$0xff] }
 0x2a2   : > { %2653 = vmatpush.msrb.mxu0 %v4177_v5  ;;  %2794 = vmatpush.msra.mxu3 %v4179_v16  ;;  %v4543_v16 = vld [vmem:[#allocation11_spill] sm:$0xff] }
 0x2a3   : > { %v2049_v42 = vmul.f32 %v1787_v4, %v987_v26  ;;  %2379 = vmatmul.f32.gmra.mxu3 %v2133_v56  ;;  %v2134_v43 = vsub.f32 %v2132_v49, %v2133_v56  ;;  %2756 = vmatpush.msra.mxu2 %v2610_v27  ;;  %v1073_v34 = vadd.f32 %v4543_v16, %v1018_v50  ;;  %v4551_v49 = vld [vmem:[#allocation17_spill] sm:$0xff]  ;;  %v4552_v4 = vld [vmem:[#allocation28_spill] sm:$0xff] }
 0x2a4   : > { %2656 = vmatpush.msrb.mxu0 %v4196_v60  ;;  %2796 = vmatpush.msra.mxu3 %v4198_v19  ;;  %v4545_v19 = vld [vmem:[#allocation15_spill] sm:$0xff]  ;;  %v4555_v16 = vld [vmem:[#allocation29_spill] sm:$0xff] }
 0x2a5   : > { %v2135_v5 = vand.u32 4294901760, %v2134_v43  ;;  %v4299_v3 = vand.u32 4294901760, %v2049_v42  ;;  %2760 = vmatpush.msra.mxu2 %v2616_v54  ;;  %v1111_v1 = vadd.f32 %v4544_v29, %v1073_v34  ;;  %v1818_v54 = vadd.f32 %v4184_v55, %v4297_v13  ;;  %v4554_v43 = vld [vmem:[#allocation20_spill] sm:$0xff] }
 0x2a6   : > { %v1755_v23 = vpop.f32.mrf.mxu0  ;;  %2659 = vmatpush.msrb.mxu0 %v4215_v2  ;;  %2798 = vmatpush.msra.mxu3 %v4221_v59  ;;  %v991_v2 = vadd.f32 %v4545_v19, %v956_v20  ;;  %v1950_v17 = vpop.f32.mrf.mxu1  ;;  %v1077_v55 = vadd.f32 %v4548_v12, %v1026_v18 }
 0x2a7   : > { %v1756_v60 = vadd.f32 %v1755_v23, %v1717_v14  ;;  %v4306_v27 = vpop.f32.mrf.mxu2  ;;  %2136 = vmatmul.f32.gmra.mxu0 %v2135_v5  ;;  %2261 = vmatmul.f32.gmra.mxu1 %v4299_v3  ;;  %v2140_v35 = vsub.f32 %v2049_v42, %v4299_v3  ;;  %v1151_v7 = vadd.f32 %v4547_v36, %v1111_v1 }
 0x2a8   : > { %v4311_v61 = vpop.f32.mrf.mxu3  ;;  %2662 = vmatpush.msrb.mxu0 %v4231_v9  ;;  %v1873_v59 = vadd.f32 %v4191_v39, %v1818_v54  ;;  %v1116_v45 = vadd.f32 %v4550_v38, %v1077_v55  ;;  %v1826_v39 = vadd.f32 %v4241_v30, %v4297_v13  ;;  %v4561_v55 = vld [vmem:[#allocation34_spill] sm:$0xff] }
 0x2a9   : > { %v1791_v57 = vadd.f32 %v1790_v31, %v1756_v60  ;;  %2329 = vmatmul.f32.gmra.mxu2 %v2140_v35  ;;  %v2141_v22 = vand.u32 4294901760, %v2140_v35  ;;  %v1196_v15 = vadd.f32 %v4549_v52, %v1151_v7  ;;  %v1034_v31 = vadd.f32 %v4551_v49, %v4270_v24  ;;  %v4556_v60 = vld [vmem:[#allocation31_spill] sm:$0xff]  ;;  %v4563_v49 = vld [vmem:[#allocation30_spill] sm:$0xff] }
 0x2aa   : > { %v1157_v50 = vadd.f32 %v4553_v53, %v1116_v45  ;;  %v1877_v10 = vadd.f32 %v4247_v8, %v1826_v39  ;;  %v1834_v8 = vadd.f32 %v4274_v25, %v4297_v13 }
 0x2ab   : > { %v2051_v37 = vmul.f32 %v1791_v57, %v991_v2  ;;  %2385 = vmatmul.f32.gmra.mxu3 %v2141_v22  ;;  %v2142_v6 = vsub.f32 %v2140_v35, %v2141_v22  ;;  %v1231_v56 = vadd.f32 %v4552_v4, %v1196_v15  ;;  %v1081_v30 = vadd.f32 %v4554_v43, %v1034_v31  ;;  %v4557_v2 = vld [vmem:[#allocation23_spill] sm:$0xff]  ;;  %v4558_v22 = vld [vmem:[#allocation26_spill] sm:$0xff] }
 0x2ac   : > { %v1200_v35 = vadd.f32 %v4556_v60, %v1157_v50  ;;  %v1042_v54 = vadd.f32 %v4557_v2, %v4270_v24  ;;  %v1881_v18 = vadd.f32 %v4278_v11, %v1834_v8  ;;  %v1842_v15 = vadd.f32 %v4306_v27, %v4297_v13 }
 0x2ad   : > { %v2143_v9 = vand.u32 4294901760, %v2142_v6  ;;  %v4322_v46 = vand.u32 4294901760, %v2051_v37  ;;  %v1121_v34 = vadd.f32 %v4555_v16, %v1081_v30 }
 0x2ae   : > { %v1910_v62 = vpop.f32.mrf.mxu0  ;;  %v1956_v47 = vpop.f32.mrf.mxu1 }
 0x2af   : > { %v1911_v58 = vadd.f32 %v1910_v62, %v1873_v59  ;;  %v1995_v48 = vpop.f32.mrf.mxu2  ;;  %2144 = vmatmul.f32.gmra.mxu0 %v2143_v9  ;;  %2265 = vmatmul.f32.gmra.mxu1 %v4322_v46  ;;  %v2148_v21 = vsub.f32 %v2051_v37, %v4322_v46  ;;  %v4559_v37 = vld [vmem:[#allocation33_spill] sm:$0xff]  ;;  %v4560_v9 = vld [vmem:[#allocation24_spill] sm:$0xff] }
 0x2b0   : > { %v2030_v0 = vpop.f32.mrf.mxu3  ;;  %v1235_v25 = vadd.f32 %v4559_v37, %v1200_v35  ;;  %v1085_v62 = vadd.f32 %v4560_v9, %v1042_v54 }
 0x2b1   : > { %v1951_v51 = vadd.f32 %v1950_v17, %v1911_v58  ;;  %2334 = vmatmul.f32.gmra.mxu2 %v2148_v21  ;;  %v2149_v41 = vand.u32 4294901760, %v2148_v21  ;;  %v1163_v17 = vadd.f32 %v4558_v22, %v1121_v34  ;;  %v4566_v34 = vld [vmem:[#allocation37_spill] sm:$0xff] }
 0x2b3   : > { %v1996_v33 = vadd.f32 %v1995_v48, %v1951_v51  ;;  %2391 = vmatmul.f32.gmra.mxu3 %v2149_v41  ;;  %v2150_v26 = vsub.f32 %v2148_v21, %v2149_v41  ;;  %v1204_v58 = vadd.f32 %v4561_v55, %v1163_v17  ;;  %v4562_v21 = vld [vmem:[#allocation32_spill] sm:$0xff] }
 0x2b4   : > { %v1126_v52 = vadd.f32 %v4562_v21, %v1085_v62 }
 0x2b5   : > { %v2031_v63 = vadd.f32 %v2030_v0, %v1996_v33  ;;  %v2151_v42 = vand.u32 4294901760, %v2150_v26  ;;  %v1885_v33 = vadd.f32 %v4311_v61, %v1842_v15  ;;  %v4564_v26 = vld [vmem:[#allocation35_spill] sm:$0xff] }
 0x2b6   : > { %v1915_v40 = vpop.f32.mrf.mxu0  ;;  %v1962_v7 = vpop.f32.mrf.mxu1  ;;  %v1169_v31 = vadd.f32 %v4563_v49, %v1126_v52 }
 0x2b7   : > { %v2046_v20 = vmul.f32 %v2031_v63, %v1231_v56  ;;  %v1916_v14 = vadd.f32 %v1915_v40, %v1877_v10  ;;  %v1999_v5 = vpop.f32.mrf.mxu2  ;;  %2152 = vmatmul.f32.gmra.mxu0 %v2151_v42  ;;  %2509 = vmatmul.f32.vlgmr.msra.gmra.mxu1 %v4227_v28  ;;  %v4565_v63 = vld [vmem:[#allocation36_spill] sm:$0xff] }
 0x2b8   : > { %v2034_v23 = vpop.f32.mrf.mxu3  ;;  %v1208_v42 = vadd.f32 %v4565_v63, %v1169_v31 }
 0x2b9   : > { %v2076_v29 = vsel %vm2074_vm2, %v2046_v20, 0  ;;  %v1957_v1 = vadd.f32 %v1956_v47, %v1916_v14  ;;  %v1239_v47 = vadd.f32 %v4564_v26, %v1204_v58  ;;  %v2817_v58 = vld [vmem:[%s4465_s5 + $0x8] sm:$0xff] }
 0x2ba   : > { %v4343_v19 = vand.u32 4294901760, %v2076_v29 }
 0x2bb   : > { %v2000_v57 = vadd.f32 %v1999_v5, %v1957_v1 }
 0x2bc   : > { %v4349_v44 = vsub.f32 %v2076_v29, %v4343_v19  ;;  %2621 = vmatmul.f32.vlgmr.msrb.gmra.mxu3 %v4343_v19 }
 0x2bd   : > { %v2035_v6 = vadd.f32 %v2034_v23, %v2000_v57  ;;  %v1243_v23 = vadd.f32 %v4566_v34, %v1208_v42 }
 0x2be   : > { %v2548_v36 = vand.u32 4294901760, %v4349_v44  ;;  %v1920_v59 = vpop.f32.mrf.mxu0  ;;  %v1968_v50 = vpop.f32.mrf.mxu1 }
 0x2bf   : > { %v2048_v24 = vmul.f32 %v2035_v6, %v1235_v25  ;;  %v1921_v12 = vadd.f32 %v1920_v59, %v1881_v18  ;;  %2460 = vmatmul.f32.vlgmr.msra.gmra.mxu0 %v4227_v28  ;;  %2513 = vmatmul.f32.gmra.mxu1 %v4266_v32  ;;  %v2003_v11 = vpop.f32.mrf.mxu2 }
 0x2c0   : > { %v2549_v48 = vsub.f32 %v4349_v44, %v2548_v36  ;;  %v2038_v51 = vpop.f32.mrf.mxu3 }
 0x2c1   : > { %v2079_v0 = vsel %vm2074_vm2, %v2048_v24, 0  ;;  %v1963_v38 = vadd.f32 %v1962_v7, %v1921_v12 }
 0x2c2   : > { %v2550_v45 = vand.u32 4294901760, %v2549_v48  ;;  %v2554_v39 = vand.u32 4294901760, %v2079_v0  ;;  %v2848_v48 = vand.u32 4294901760, %v2817_v58 }
 0x2c3   : > { %v2004_v41 = vadd.f32 %v2003_v11, %v1963_v38 }
 0x2c4   : > { %v2555_v28 = vsub.f32 %v2079_v0, %v2554_v39  ;;  %2551 = vmatmul.f32.vlgmr.msrb.gmra.mxu2 %v2550_v45  ;;  %2625 = vmatmul.f32.gmra.mxu3 %v2554_v39  ;;  %v2900_v11 = vsub.f32 %v2817_v58, %v2848_v48 }
 0x2c5   : > { %v2039_v4 = vadd.f32 %v2038_v51, %v2004_v41  ;;  %2849 = vmatpush.msra.mxu0 %v2848_v48  ;;  %2984 = vmatpush.msrb.mxu3 %v2848_v48  ;;  %v2816_v41 = vld [vmem:[%s4465_s5] sm:$0xff] }
 0x2c6   : > { %v1925_v56 = vpop.f32.mrf.mxu0  ;;  %v2556_v53 = vand.u32 4294901760, %v2555_v28  ;;  %v2901_v52 = vand.u32 4294901760, %v2900_v11  ;;  %2944 = vmatpush.msrb.mxu2 %v2900_v11 }
 0x2c7   : > { %v2050_v13 = vmul.f32 %v2039_v4, %v1239_v47  ;;  %v1926_v27 = vadd.f32 %v1925_v56, %v1885_v33  ;;  %2464 = vmatmul.f32.gmra.mxu0 %v4266_v32  ;;  %2517 = vmatmul.f32.gmra.mxu1 %v4299_v3  ;;  %v2007_v61 = vpop.f32.mrf.mxu2 }
 0x2c8   : > { %v2557_v10 = vsub.f32 %v2555_v28, %v2556_v53  ;;  %v2042_v16 = vpop.f32.mrf.mxu3  ;;  %v2902_v38 = vsub.f32 %v2900_v11, %v2901_v52 }
 0x2c9   : > { %v2082_v43 = vsel %vm2074_vm2, %v2050_v13, 0  ;;  %v1969_v30 = vadd.f32 %v1968_v50, %v1926_v27 }
 0x2ca   : > { %v2562_v40 = vand.u32 4294901760, %v2082_v43  ;;  %v2558_v20 = vand.u32 4294901760, %v2557_v10 }
 0x2cb   : > { %v2008_v14 = vadd.f32 %v2007_v61, %v1969_v30 }
 0x2cc   : > { %v2563_v5 = vsub.f32 %v2082_v43, %v2562_v40  ;;  %2559 = vmatmul.f32.gmra.mxu2 %v2558_v20  ;;  %2629 = vmatmul.f32.gmra.mxu3 %v2562_v40 }
 0x2cd   : > { %v2043_v32 = vadd.f32 %v2042_v16, %v2008_v14 }
 0x2ce   : > { %v2564_v60 = vand.u32 4294901760, %v2563_v5 }
 0x2cf   : > { %v2052_v35 = vmul.f32 %v2043_v32, %v1243_v23  ;;  %2468 = vmatmul.f32.gmra.mxu0 %v4299_v3  ;;  %2521 = vmatmul.f32.gmra.mxu1 %v4322_v46 }
 0x2d0   : > { %v2565_v8 = vsub.f32 %v2563_v5, %v2564_v60 }
 0x2d1   : > { %v2085_v29 = vsel %vm2074_vm2, %v2052_v35, 0 }
 0x2d2   : > { %v2570_v1 = vand.u32 4294901760, %v2085_v29  ;;  %v2566_v2 = vand.u32 4294901760, %v2565_v8 }
 0x2d4   : > { %v2571_v54 = vsub.f32 %v2085_v29, %v2570_v1  ;;  %2567 = vmatmul.f32.gmra.mxu2 %v2566_v2  ;;  %2633 = vmatmul.f32.gmra.mxu3 %v2570_v1 }
 0x2d6   : > { %v2572_v57 = vand.u32 4294901760, %v2571_v54 }
 0x2d7   : > { %2472 = vmatmul.f32.gmra.mxu0 %v4322_v46  ;;  %2708 = vmatmul.f32.vlgmr.msrb.gmra.mxu1 %v2548_v36 }
 0x2d8   : > { %v2573_v22 = vsub.f32 %v2571_v54, %v2572_v57 }
 0x2da   : > { %v2574_v17 = vand.u32 4294901760, %v2573_v22 }
 0x2dc   : > { %2575 = vmatmul.f32.gmra.mxu2 %v2574_v17  ;;  %2800 = vmatmul.f32.vlgmr.msra.gmra.mxu3 %v4343_v19 }
 0x2df   : > { %2665 = vmatmul.f32.vlgmr.msrb.gmra.mxu0 %v4349_v44  ;;  %2714 = vmatmul.f32.gmra.mxu1 %v2556_v53 }
 0x2e4   : > { %2762 = vmatmul.f32.vlgmr.msra.gmra.mxu2 %v4343_v19  ;;  %2804 = vmatmul.f32.gmra.mxu3 %v2554_v39 }
 0x2e7   : > { %2670 = vmatmul.f32.gmra.mxu0 %v2555_v28  ;;  %2720 = vmatmul.f32.gmra.mxu1 %v2564_v60  ;;  %v2850_v28 = vand.u32 4294901760, %v2816_v41 }
 0x2e9   : > { %2851 = vmatpush.msra.mxu0 %v2850_v28  ;;  %v2906_v33 = vsub.f32 %v2816_v41, %v2850_v28  ;;  %2986 = vmatpush.msrb.mxu3 %v2850_v28 }
 0x2eb   : > { %3029 = vmatpush.msrb.mxu0 %v2901_v52  ;;  %v2907_v26 = vand.u32 4294901760, %v2906_v33  ;;  %2947 = vmatpush.msrb.mxu2 %v2906_v33 }
 0x2ec   : > { %2766 = vmatmul.f32.gmra.mxu2 %v2554_v39  ;;  %2808 = vmatmul.f32.gmra.mxu3 %v2562_v40  ;;  %v2903_v39 = vand.u32 4294901760, %v2902_v38 }
 0x2ed   : > { %v2908_v4 = vsub.f32 %v2906_v33, %v2907_v26  ;;  %3033 = vmatpush.msrb.mxu0 %v2907_v26 }
 0x2ee   : > { %2904 = vmatpush.msra.mxu1 %v2903_v39 }
 0x2ef   : > { %2675 = vmatmul.f32.gmra.mxu0 %v2563_v5  ;;  %2726 = vmatmul.f32.gmra.mxu1 %v2572_v57  ;;  %v2909_v13 = vand.u32 4294901760, %v2908_v4 }
 0x2f1   : > { %2910 = vmatpush.msra.mxu1 %v2909_v13 }
 0x2f3   : > { %3066 = vmatpush.msrb.mxu1 %v2848_v48 }
 0x2f4   : > { %2770 = vmatmul.f32.gmra.mxu2 %v2562_v40  ;;  %2812 = vmatmul.f32.gmra.mxu3 %v2570_v1 }
 0x2f5   : > { %3068 = vmatpush.msrb.mxu1 %v2850_v28 }
 0x2f7   : > { %2680 = vmatmul.f32.gmra.mxu0 %v2571_v54 }
 0x2fc   : > { %2774 = vmatmul.f32.gmra.mxu2 %v2570_v1 }
 0x314   : > { %v2254_v3 = vpop.f32.mrf.mxu1 }
 0x31c   : > { %v2129_v46 = vpop.f32.mrf.mxu0  ;;  %v2258_v18 = vpop.f32.mrf.mxu1 }
 0x31d   : > { %v2320_v25 = vpop.f32.mrf.mxu2  ;;  %v2255_v56 = vadd.f32 %v2254_v3, %v2129_v46 }
 0x31e   : > { %v2374_v37 = vpop.f32.mrf.mxu3 }
 0x31f   : > { %v2321_v10 = vadd.f32 %v2320_v25, %v2255_v56 }
 0x321   : > { %v2375_v63 = vadd.f32 %v2374_v37, %v2321_v10 }
 0x324   : > { %v2137_v44 = vpop.f32.mrf.mxu0  ;;  %v2262_v6 = vpop.f32.mrf.mxu1 }
 0x325   : > { %v2325_v19 = vpop.f32.mrf.mxu2  ;;  %v2259_v42 = vadd.f32 %v2258_v18, %v2137_v44 }
 0x326   : > { %v2380_v36 = vpop.f32.mrf.mxu3 }
 0x327   : > { %v2326_v20 = vadd.f32 %v2325_v19, %v2259_v42 }
 0x329   : > { %v2381_v16 = vadd.f32 %v2380_v36, %v2326_v20 }
 0x32c   : > { %v2145_v7 = vpop.f32.mrf.mxu0  ;;  %v4379_v59 = vpop.f32.mrf.mxu1 }
 0x32d   : > { %v2330_v24 = vpop.f32.mrf.mxu2  ;;  %v2263_v34 = vadd.f32 %v2262_v6, %v2145_v7 }
 0x32e   : > { %v4381_v9 = vpop.f32.mrf.mxu3 }
 0x32f   : > { %v2331_v29 = vadd.f32 %v2330_v24, %v2263_v34 }
 0x331   : > { %v2387_v22 = vadd.f32 %v4381_v9, %v2331_v29 }
 0x334   : > { %v4383_v62 = vpop.f32.mrf.mxu0  ;;  %v2510_v55 = vpop.f32.mrf.mxu1 }
 0x335   : > { %v2335_v15 = vpop.f32.mrf.mxu2  ;;  %v2267_v17 = vadd.f32 %v4379_v59, %v4383_v62 }
 0x336   : > { %v4385_v12 = vpop.f32.mrf.mxu3 }
 0x337   : > { %v2336_v44 = vadd.f32 %v2335_v15, %v2267_v17 }
 0x339   : > { %v2393_v58 = vadd.f32 %v4385_v12, %v2336_v44  ;;  %v3352_v44 = vld [vmem:[%s4466_s6] ss:$0 sm:$0xff] }
 0x33c   : > { %v2461_v21 = vpop.f32.mrf.mxu0  ;;  %v2514_v45 = vpop.f32.mrf.mxu1 }
 0x33d   : > { %v2462_v40 = vadd.f32 %v2461_v21, %v2375_v63 }
 0x33f   : > { %v2622_v0 = vpop.f32.mrf.mxu3  ;;  %v2511_v5 = vadd.f32 %v2510_v55, %v2462_v40 }
 0x344   : > { %v2465_v51 = vpop.f32.mrf.mxu0  ;;  %v2518_v47 = vpop.f32.mrf.mxu1 }
 0x345   : > { %v2466_v60 = vadd.f32 %v2465_v51, %v2381_v16 }
 0x347   : > { %v2552_v49 = vpop.f32.mrf.mxu2  ;;  %v2626_v31 = vpop.f32.mrf.mxu3  ;;  %v2515_v2 = vadd.f32 %v2514_v45, %v2466_v60 }
 0x348   : > { %v2553_v23 = vadd.f32 %v2552_v49, %v2511_v5 }
 0x34a   : > { %v2623_v1 = vadd.f32 %v2622_v0, %v2553_v23 }
 0x34c   : > { %v2469_v53 = vpop.f32.mrf.mxu0  ;;  %v2522_v30 = vpop.f32.mrf.mxu1 }
 0x34d   : > { %v2470_v18 = vadd.f32 %v2469_v53, %v2387_v22 }
 0x34f   : > { %v2560_v27 = vpop.f32.mrf.mxu2  ;;  %v2630_v50 = vpop.f32.mrf.mxu3  ;;  %v2519_v7 = vadd.f32 %v2518_v47, %v2470_v18 }
 0x350   : > { %v2561_v3 = vadd.f32 %v2560_v27, %v2515_v2 }
 0x352   : > { %v2627_v6 = vadd.f32 %v2626_v31, %v2561_v3 }
 0x354   : > { %v2473_v43 = vpop.f32.mrf.mxu0  ;;  %v2709_v35 = vpop.f32.mrf.mxu1 }
 0x355   : > { %v2474_v62 = vadd.f32 %v2473_v43, %v2393_v58 }
 0x357   : > { %v2568_v61 = vpop.f32.mrf.mxu2  ;;  %v2634_v14 = vpop.f32.mrf.mxu3  ;;  %v2523_v51 = vadd.f32 %v2522_v30, %v2474_v62 }
 0x358   : > { %v2569_v48 = vadd.f32 %v2568_v61, %v2519_v7 }
 0x35a   : > { %v2631_v38 = vadd.f32 %v2630_v50, %v2569_v48 }
 0x35c   : > { %v2666_v32 = vpop.f32.mrf.mxu0  ;;  %v2715_v19 = vpop.f32.mrf.mxu1 }
 0x35d   : > { %v2667_v54 = vadd.f32 %v2666_v32, %v2623_v1 }
 0x35f   : > { %v2576_v8 = vpop.f32.mrf.mxu2  ;;  %v2801_v57 = vpop.f32.mrf.mxu3  ;;  %v2710_v37 = vadd.f32 %v2709_v35, %v2667_v54 }
 0x360   : > { %v2577_v31 = vadd.f32 %v2576_v8, %v2523_v51 }
 0x362   : > { %v2635_v50 = vadd.f32 %v2634_v14, %v2577_v31 }
 0x364   : > { %v2671_v46 = vpop.f32.mrf.mxu0  ;;  %v2721_v28 = vpop.f32.mrf.mxu1 }
 0x365   : > { %v2672_v24 = vadd.f32 %v2671_v46, %v2627_v6 }
 0x367   : > { %v2763_v25 = vpop.f32.mrf.mxu2  ;;  %v2805_v11 = vpop.f32.mrf.mxu3  ;;  %v2716_v52 = vadd.f32 %v2715_v19, %v2672_v24 }
 0x368   : > { %v2764_v36 = vadd.f32 %v2763_v25, %v2710_v37 }
 0x36a   : > { %v2802_v55 = vadd.f32 %v2801_v57, %v2764_v36 }
 0x36c   : > { %v2823_v9 = vsel %vm454_vm0, %v2802_v55, 0  ;;  %v2676_v59 = vpop.f32.mrf.mxu0  ;;  %v2727_v61 = vpop.f32.mrf.mxu1 }
 0x36d   : > { %v4398_v21 = vand.u32 4294901760, %v2823_v9  ;;  %v2677_v12 = vadd.f32 %v2676_v59, %v2631_v38 }
 0x36f   : > { %v2853_v0 = vsub.f32 %v2823_v9, %v4398_v21  ;;  %v2767_v15 = vpop.f32.mrf.mxu2  ;;  %2912 = vmatmul.f32.vlgmr.msra.gmra.mxu1 %v4398_v21  ;;  %v2809_v4 = vpop.f32.mrf.mxu3  ;;  %v2722_v56 = vadd.f32 %v2721_v28, %v2677_v12 }
 0x370   : > { %v2768_v45 = vadd.f32 %v2767_v15, %v2716_v52 }
 0x371   : > { %v2854_v39 = vand.u32 4294901760, %v2853_v0  ;;  %2950 = vmatmul.f32.vlgmr.msrb.gmra.mxu2 %v2853_v0 }
 0x372   : > { %v2806_v41 = vadd.f32 %v2805_v11, %v2768_v45 }
 0x373   : > { %v2855_v49 = vsub.f32 %v2853_v0, %v2854_v39  ;;  %2990 = vmatmul.f32.vlgmr.msrb.gmra.mxu3 %v2854_v39 }
 0x374   : > { %v2826_v33 = vsel %vm454_vm0, %v2806_v41, 0  ;;  %v2681_v53 = vpop.f32.mrf.mxu0 }
 0x375   : > { %v2856_v26 = vand.u32 4294901760, %v2855_v49  ;;  %v2860_v47 = vand.u32 4294901760, %v2826_v33  ;;  %v2682_v42 = vadd.f32 %v2681_v53, %v2635_v50 }
 0x377   : > { %v2771_v13 = vpop.f32.mrf.mxu2  ;;  %2857 = vmatmul.f32.vlgmr.msra.gmra.mxu0 %v2856_v26  ;;  %2916 = vmatmul.f32.gmra.mxu1 %v2860_v47  ;;  %v2861_v27 = vsub.f32 %v2826_v33, %v2860_v47  ;;  %v2728_v16 = vadd.f32 %v2727_v61, %v2682_v42  ;;  %v2813_v60 = vpop.f32.mrf.mxu3 }
 0x378   : > { %v2772_v10 = vadd.f32 %v2771_v13, %v2722_v56 }
 0x379   : > { %2955 = vmatmul.f32.gmra.mxu2 %v2861_v27  ;;  %v2862_v63 = vand.u32 4294901760, %v2861_v27 }
 0x37a   : > { %v2810_v43 = vadd.f32 %v2809_v4, %v2772_v10 }
 0x37b   : > { %2996 = vmatmul.f32.gmra.mxu3 %v2862_v63  ;;  %v2863_v30 = vsub.f32 %v2861_v27, %v2862_v63 }
 0x37c   : > { %v2829_v40 = vsel %vm454_vm0, %v2810_v43, 0 }
 0x37d   : > { %v2868_v20 = vand.u32 4294901760, %v2829_v40  ;;  %v2864_v5 = vand.u32 4294901760, %v2863_v30 }
 0x37f   : > { %v2775_v34 = vpop.f32.mrf.mxu2  ;;  %2865 = vmatmul.f32.gmra.mxu0 %v2864_v5  ;;  %2920 = vmatmul.f32.gmra.mxu1 %v2868_v20  ;;  %v2869_v23 = vsub.f32 %v2829_v40, %v2868_v20 }
 0x380   : > { %v2776_v32 = vadd.f32 %v2775_v34, %v2728_v16 }
 0x381   : > { %2960 = vmatmul.f32.gmra.mxu2 %v2869_v23  ;;  %v2870_v14 = vand.u32 4294901760, %v2869_v23 }
 0x382   : > { %v2814_v35 = vadd.f32 %v2813_v60, %v2776_v32 }
 0x383   : > { %3002 = vmatmul.f32.gmra.mxu3 %v2870_v14  ;;  %v2871_v8 = vsub.f32 %v2869_v23, %v2870_v14 }
 0x384   : > { %v2832_v29 = vsel %vm454_vm0, %v2814_v35, 0 }
 0x385   : > { %v2876_v1 = vand.u32 4294901760, %v2832_v29  ;;  %v2872_v2 = vand.u32 4294901760, %v2871_v8 }
 0x387   : > { %2873 = vmatmul.f32.gmra.mxu0 %v2872_v2  ;;  %2924 = vmatmul.f32.gmra.mxu1 %v2876_v1  ;;  %v2877_v54 = vsub.f32 %v2832_v29, %v2876_v1 }
 0x389   : > { %2965 = vmatmul.f32.gmra.mxu2 %v2877_v54  ;;  %v2878_v57 = vand.u32 4294901760, %v2877_v54 }
 0x38b   : > { %3008 = vmatmul.f32.gmra.mxu3 %v2878_v57  ;;  %v2879_v22 = vsub.f32 %v2877_v54, %v2878_v57 }
 0x38d   : > { %v2880_v17 = vand.u32 4294901760, %v2879_v22 }
 0x38f   : > { %2881 = vmatmul.f32.gmra.mxu0 %v2880_v17  ;;  %3070 = vmatmul.f32.vlgmr.msrb.gmra.mxu1 %v4398_v21 }
 0x397   : > { %3035 = vmatmul.f32.vlgmr.msrb.gmra.mxu0 %v4398_v21  ;;  %3074 = vmatmul.f32.gmra.mxu1 %v2860_v47 }
 0x39f   : > { %3039 = vmatmul.f32.gmra.mxu0 %v2860_v47  ;;  %3078 = vmatmul.f32.gmra.mxu1 %v2868_v20 }
 0x3a7   : > { %3043 = vmatmul.f32.gmra.mxu0 %v2868_v20  ;;  %3082 = vmatmul.f32.gmra.mxu1 %v2876_v1 }
 0x3af   : > { %3047 = vmatmul.f32.gmra.mxu0 %v2876_v1 }
 0x3ec   : > { %v2913_v3 = vpop.f32.mrf.mxu1 }
 0x3f4   : > { %v2858_v46 = vpop.f32.mrf.mxu0  ;;  %v2917_v18 = vpop.f32.mrf.mxu1 }
 0x3f5   : > { %v2859_v19 = vadd.f32 %v3352_v44, %v2858_v46  ;;  %v2951_v7 = vpop.f32.mrf.mxu2 }
 0x3f6   : > { %v2991_v55 = vpop.f32.mrf.mxu3 }
 0x3f7   : > { %v2914_v24 = vadd.f32 %v2913_v3, %v2859_v19 }
 0x3f9   : > { %v2952_v48 = vadd.f32 %v2951_v7, %v2914_v24 }
 0x3fb   : > { %v2992_v59 = vadd.f32 %v2991_v55, %v2952_v48 }
 0x3fc   : > { %v2866_v37 = vpop.f32.mrf.mxu0  ;;  %v2921_v25 = vpop.f32.mrf.mxu1 }
 0x3fd   : > { %v2867_v9 = vadd.f32 %v3352_v44, %v2866_v37  ;;  %v2956_v21 = vpop.f32.mrf.mxu2 }
 0x3fe   : > { %v2997_v15 = vpop.f32.mrf.mxu3 }
 0x3ff   : > { %v2918_v62 = vadd.f32 %v2917_v18, %v2867_v9 }
 0x401   : > { %v2957_v38 = vadd.f32 %v2956_v21, %v2918_v62 }
 0x403   : > { %v2998_v12 = vadd.f32 %v2997_v15, %v2957_v38 }
 0x404   : > { %v2874_v6 = vpop.f32.mrf.mxu0  ;;  %v2925_v36 = vpop.f32.mrf.mxu1 }
 0x405   : > { %v2875_v45 = vadd.f32 %v3352_v44, %v2874_v6  ;;  %v2961_v28 = vpop.f32.mrf.mxu2 }
 0x406   : > { %v3003_v4 = vpop.f32.mrf.mxu3 }
 0x407   : > { %v2922_v41 = vadd.f32 %v2921_v25, %v2875_v45 }
 0x409   : > { %v2962_v33 = vadd.f32 %v2961_v28, %v2922_v41 }
 0x40b   : > { %v3004_v56 = vadd.f32 %v3003_v4, %v2962_v33 }
 0x40c   : > { %v2882_v58 = vpop.f32.mrf.mxu0  ;;  %v3071_v11 = vpop.f32.mrf.mxu1 }
 0x40d   : > { %v2883_v26 = vadd.f32 %v3352_v44, %v2882_v58  ;;  %v2966_v10 = vpop.f32.mrf.mxu2 }
 0x40e   : > { %v3009_v43 = vpop.f32.mrf.mxu3 }
 0x40f   : > { %v2926_v53 = vadd.f32 %v2925_v36, %v2883_v26 }
 0x411   : > { %v2967_v63 = vadd.f32 %v2966_v10, %v2926_v53 }
 0x413   : > { %v3010_v30 = vadd.f32 %v3009_v43, %v2967_v63 }
 0x414   : > { %v3036_v52 = vpop.f32.mrf.mxu0  ;;  %v3075_v51 = vpop.f32.mrf.mxu1 }
 0x415   : > { %v3037_v0 = vadd.f32 %v3036_v52, %v2992_v59 }
 0x417   : > { %v3072_v39 = vadd.f32 %v3071_v11, %v3037_v0 }
 0x419   : > { %3087 = vst.msk [vmem:[%s4411_s17] sm:$0xff] %vm3086_vm3, %v3072_v39 }
 0x41c   : > { %v3040_v49 = vpop.f32.mrf.mxu0  ;;  %v3079_v13 = vpop.f32.mrf.mxu1 }
 0x41d   : > { %v3041_v31 = vadd.f32 %v3040_v49, %v2998_v12 }
 0x41f   : > { %v3076_v47 = vadd.f32 %v3075_v51, %v3041_v31 }
 0x421   : > { %3088 = vst.msk [vmem:[%s4411_s17 + $0x8] sm:$0xff] %vm3086_vm3, %v3076_v47 }
 0x424   : > { %v3044_v27 = vpop.f32.mrf.mxu0  ;;  %v3083_v20 = vpop.f32.mrf.mxu1 }
 0x425   : > { %v3045_v50 = vadd.f32 %v3044_v27, %v3004_v56 }
 0x427   : > { %v3080_v42 = vadd.f32 %v3079_v13, %v3045_v50 }
 0x429   : > { %3089 = vst.msk [vmem:[%s4411_s17 + $0x10] sm:$0xff] %vm3086_vm3, %v3080_v42 }
 0x42c   : > { %v3048_v40 = vpop.f32.mrf.mxu0 }
 0x42d   : > { %v3049_v61 = vadd.f32 %v3048_v40, %v3010_v30 }
 0x42f   : > { %v3084_v5 = vadd.f32 %v3083_v20, %v3049_v61 }
 0x431   : > { %3090 = vst.msk [vmem:[%s4411_s17 + $0x18] sm:$0xff] %vm3086_vm3, %v3084_v5 }
 0x432   : > { %3380 = shalt.err (!%p3377_p7)
}
 0x433   : > { %s3433_s10 = smov 128   ;;  %s3434_s17 = smov 8  }
 0x434   : > { %3295 = dma.vmem_to_hbm [thread:$0]  (%p3514_p5), %s3106_s22, 512, %s3108_s23, %s3092_s27, %s3433_s10, %s3433_s10, %s3434_s17  }
 0x435 PF: > { %s3122_s20 = sand.u32 1, %s3411_s24   ;;  %p3298_p8 = pnand %p3266_p10, %p3525_p9 }
 0x436   : > { %s3123_s21 = scalar_lea.sflag [#allocation4], %s3122_s20 }
 0x437   : > { %p3299_p11 = pneg %p3298_p8 }
 0x439   : > { %3406 = dma.done.wait (%p3299_p11), %s3123_s21, 512  }
 0x43a   : > { %3408 = vsyncadd (%p3299_p11), %s3123_s21, 4294966784  ;;  %s20_s29 = sadd.s32 1, %s3431_s29   ;;  %s4567_s24 = smov %s3415_s25 }
 0x43b   : > { %p17_p12 = scmp.ge.s32.totalorder %s20_s29, 4   ;;  %s4568_s25 = smov %s3419_s26 }
 0x43c   : > { %s4569_s26 = smov %s3523_s13  ;;  %s4570_s27 = smov %s3427_s28 }
 0x43d   : > { %s4571_s28 = smov %s4573_s9  ;;  %19 = sbr.rel (!%p17_p12) target bundleno = 4 (0x4), region = 145 }
 0x442   :  { %3129 = vsyncpa [#allocation4], 1 }
 0x443   :  { %3131 = vsyncpa [#allocation4 + $0x1], 1 }

</bundles_post_ra>
